<compile_context>
chip_gen: v5e
topology: v5e:2x2
jax: 0.10.0
libtpu: 0.0.40
codegen_flags: <defaults>
</compile_context>

<pallas_src>
import jax
import jax.numpy as jnp
from jax.experimental import pallas as pl
from jax.experimental.pallas import tpu as pltpu

_LANE = 128
_SUBLANE = 8


def _lane(v):
    return -(-v // _LANE) * _LANE


def _sub(v):
    return -(-v // _SUBLANE) * _SUBLANE


def _vmem_capacity_bytes():
    try:
        return int(pltpu.get_tpu_info().vmem_capacity_bytes)
    except Exception:
        return 64 << 20            # conservative default (v7x per-TensorCore VMEM)


def _choose_k(n, Eout):
    """Lane-packing factor: pack k adjacent edge columns so k*Eout fills vregs."""
    if Eout % _LANE == 0:
        return 1
    for k in (8, 4, 2):
        if (k * Eout) % _LANE == 0 and k * Eout <= 2 * _LANE and n % (_SUBLANE * k) == 0:
            return k
    return 1


def _step_vmem_estimate(BT, TN, n, k, Ein, Fin, Eout, w_bytes):
    """Conservative per-grid-step VMEM footprint (double-buffered IO + temporaries)."""
    nk = n // k
    kE = k * Eout
    io = (BT * k * _sub(TN) * _lane(nk) * 4                  # A (de-interleaved) tile
          + BT * TN * _sub(nk) * _lane(k * Ein) * w_bytes    # W tile (caller dtype)
          + BT * _sub(nk) * _lane(k * Fin) * 4               # packed x (whole graph)
          + BT * _sub(TN) * _lane(Fin) * 4                   # x rows of this tile
          + BT * TN * _sub(nk) * _lane(kE) * 2               # W_new tile (bf16 out)
          + BT * _sub(TN) * _lane(Eout) * 4)                 # x_new tile
    io *= 2                                                  # double-buffered pipeline
    # Large per-bt temporaries (agate, mm1-out/h, h bf16, W_new f32, agg product).
    # BT is a static unroll, so every copy is counted (live ranges are not bounded).
    tmp = BT * TN * _sub(nk) * _lane(kE) * (4 + 4 + 2 + 4 + 4)
    return io + tmp + (2 << 20)                              # params + slack


def _choose_tiles(b, n, k, Ein, Fin, Eout, w_bytes):
    cap = _vmem_capacity_bytes()
    budget = cap // 2

    def est(bt, tn):
        return _step_vmem_estimate(bt, tn, n, k, Ein, Fin, Eout, w_bytes)

    cands = [t for t in range(_SUBLANE, n + 1, _SUBLANE) if n % t == 0]
    if not cands:
        cands = [n]                        # n not a multiple of 8 -> whole-row tiles
    fitting = [t for t in cands if est(1, t) <= budget]
    # TODO(synk): very large n additionally needs column (j) tiling; only rows here.
    TN = max(fitting) if fitting else min(cands)

    # Keep >= 4 grid steps when possible (v7x has 2 TensorCores + pipeline startup).
    min_steps = 4
    while b * (n // TN) < min_steps:
        smaller = [t for t in cands if t < TN]
        if not smaller:
            break
        TN = max(smaller)

    BT = 1
    if TN == n and b > 1:                  # small-graph batch packing
        for cand in range(min(b, 4), 1, -1):
            if (b % cand == 0 and (b // cand) * (n // TN) >= min_steps
                    and est(cand, TN) <= budget):
                BT = cand
                break

    vmem_limit = int(min(max(2 * est(BT, TN), 32 << 20), int(0.8 * cap)))
    return BT, TN, vmem_limit


def _make_kernel(BT, TN, n, k, Ein, Fin, Eout):
    f32, bf16 = jnp.float32, jnp.bfloat16
    nk = n // k
    kE = k * Eout

    def kernel(a_ref, w_ref, xp_ref, x_ref,
               we1a_ref, we1b_ref, be1_ref, we2_ref, be2_ref,
               wn1_ref, bn1_ref, wn2_ref, bn2_ref,
               ws1_ref, bs1_ref, ws2_ref, bs2_ref,
               wnew_ref, xnew_ref):
        # Small parameters (block-diagonal replicated in the wrapper), loaded once.
        we1a = we1a_ref[...]                       # (k*Ein, k*Eout) bf16
        we1b = we1b_ref[...]                       # (k*Fin, k*Eout) f32
        be1 = be1_ref[0]                           # (k*Eout,)
        we2 = we2_ref[...]                         # (k*Eout, k*Eout) bf16
        be2 = be2_ref[0]
        wn1, bn1 = wn1_ref[...], bn1_ref[0]        # n_func, block-diagonal, f32
        wn2, bn2 = wn2_ref[...], bn2_ref[0]
        ws1, bs1 = ws1_ref[...], bs1_ref[0]        # n_self_func, plain weights
        ws2, bs2 = ws2_ref[...], bs2_ref[0]

        def mlp(v, w1, b1, w2, b2):
            h1 = jax.nn.relu(jnp.dot(v, w1, preferred_element_type=f32) + b1)
            return jax.nn.relu(jnp.dot(h1, w2, preferred_element_type=f32) + b2)

        for bt in range(BT):                       # static unroll; BT>1 only for small n
            # ---- per-node (column j) features, directly in the packed lane layout ----
            # TODO(synk): recomputed once per row tile when TN < n (modest extra work).
            xp = xp_ref[bt]                                               # (n/k, k*Fin)
            xe_cat = jnp.dot(xp, we1b, preferred_element_type=f32)        # (n/k, k*Eout)
            x1_cat = mlp(xp, wn1, bn1, wn2, bn2)                          # (n/k, k*F)
            xs = mlp(x_ref[bt], ws1, bs1, ws2, bs2)                       # (TN, F)

            # ---- adjacency: row degree + lane-expanded 0/1 gate (k*Eout lanes) ----
            deg = None
            gate_parts = []
            for t in range(k):
                at = a_ref[bt, t]                                         # (TN, n/k)
                d = jnp.sum(jnp.abs(at), axis=1, keepdims=True)
                deg = d if deg is None else deg + d
                gate_parts.append(
                    jnp.broadcast_to(at[:, :, None], (TN, nk, Eout)))
            agate = gate_parts[0] if k == 1 else jnp.concatenate(gate_parts, axis=-1)

            # ---- e_func: concat(W, A*x_j) folded into block-diagonal split matmuls ----
            wf = w_ref[bt].reshape(TN * nk, k * Ein)                      # leading merge
            wp = jnp.dot(wf.astype(bf16), we1a, preferred_element_type=f32)
            h = jax.nn.relu(wp.reshape(TN, nk, kE)
                            + agate * xe_cat[None, :, :] + be1)
            wn_flat = jax.nn.relu(
                jnp.dot(h.reshape(TN * nk, kE).astype(bf16), we2,
                        preferred_element_type=f32) + be2)
            wn3 = wn_flat.reshape(TN, nk, kE)
            wnew_ref[bt] = wn3.astype(wnew_ref.dtype)                     # lane-dense store

            # ---- aggregation with row-L1 normalization of A (eps = 1e-12) ----
            p = jnp.sum(agate * wn3 * x1_cat[None, :, :], axis=1)         # (TN, k*Eout)
            agg = p[:, 0:Eout]
            for t in range(1, k):                                         # k-group lane sum
                agg = agg + p[:, t * Eout:(t + 1) * Eout]
            inv = 1.0 / jnp.maximum(deg, 1e-12)
            xnew_ref[bt] = (inv * agg + xs).astype(xnew_ref.dtype)

    return kernel


def gnn_layer(A, W, x, params):
    """GNNLayer(edge_emb=True, sk_channel=0) forward with norm=True.

    A: (b, n, n) 0/1 adjacency (f32); W: (b, n, n, Ein) edge features (bf16 or f32);
    x: (b, n, Fin) node features (f32). Linear weights are stored (in, out); e_func's
    first Linear is pre-split into the W part (we1a) and the A*x part (we1b) of the
    input concatenation. Returns (W_new bf16 (b, n, n, Eout), x_new f32 (b, n, F)).
    """
    b, n, _ = A.shape
    Ein = W.shape[-1]
    Fin = x.shape[-1]
    Eout = params["we2"].shape[-1]
    F = params["wn2"].shape[-1]
    assert F == Eout                      # sk_channel == 0 => out_nfeat == out_efeat

    k = _choose_k(n, Eout)
    BT, TN, vmem_limit = _choose_tiles(b, n, k, Ein, Fin, Eout, W.dtype.itemsize)
    assert b % BT == 0 and n % TN == 0
    nk = n // k
    kE = k * Eout

    # Free contiguous HBM reinterpretations (W, x) and one cheap XLA pass over A.
    W_pk = W.reshape(b, n, nk, k * Ein)
    A_de = A.reshape(b, n, nk, k).transpose(0, 3, 1, 2)       # (b, k, n, n/k)
    x_pk = x.reshape(b, nk, k * Fin)

    eye = jnp.eye(k, dtype=jnp.float32)
    blk = lambda w: jnp.kron(eye, w)                          # block-diagonal replication
    rep = lambda v: jnp.tile(v, (1, k))
    packed_params = [
        blk(params["we1a"]).astype(jnp.bfloat16),             # (k*Ein, k*Eout)
        blk(params["we1b"]),                                  # (k*Fin, k*Eout) f32
        rep(params["be1"]),
        blk(params["we2"]).astype(jnp.bfloat16),              # (k*Eout, k*Eout)
        rep(params["be2"]),
        blk(params["wn1"]), rep(params["bn1"]),
        blk(params["wn2"]), rep(params["bn2"]),
        params["ws1"], params["bs1"], params["ws2"], params["bs2"],
    ]

    grid = (b // BT, n // TN)
    kernel = _make_kernel(BT, TN, n, k, Ein, Fin, Eout)

    def full_spec(shape):
        nd = len(shape)
        return pl.BlockSpec(shape, lambda bi, ri, _nd=nd: (0,) * _nd)

    in_specs = [
        pl.BlockSpec((BT, k, TN, nk), lambda bi, ri: (bi, 0, ri, 0)),        # A_de
        pl.BlockSpec((BT, TN, nk, k * Ein), lambda bi, ri: (bi, ri, 0, 0)),  # W packed
        pl.BlockSpec((BT, nk, k * Fin), lambda bi, ri: (bi, 0, 0)),          # x packed
        pl.BlockSpec((BT, TN, Fin), lambda bi, ri: (bi, ri, 0)),             # x rows
    ] + [full_spec(p.shape) for p in packed_params]

    out_specs = (
        pl.BlockSpec((BT, TN, nk, kE), lambda bi, ri: (bi, ri, 0, 0)),
        pl.BlockSpec((BT, TN, F), lambda bi, ri: (bi, ri, 0)),
    )
    out_shape = (
        jax.ShapeDtypeStruct((b, n, nk, kE), jnp.bfloat16),   # W_new (packed view)
        jax.ShapeDtypeStruct((b, n, F), jnp.float32),         # x_new
    )
    wn_pk, x_new = pl.pallas_call(
        kernel,
        grid=grid,
        in_specs=in_specs,
        out_specs=out_specs,
        out_shape=out_shape,
        compiler_params=pltpu.CompilerParams(
            dimension_semantics=("parallel", "parallel"),
            vmem_limit_bytes=vmem_limit),
    )(A_de, W_pk, x_pk, x, *packed_params)
    return wn_pk.reshape(b, n, n, Eout), x_new


gnn_layer_jit = jax.jit(gnn_layer)


def reference(A, W, x, p):
    """Plain-JAX f32 mirror of the PyTorch forward (edge_emb=True, sk_channel=0)."""
    W1 = A[..., None] * x[:, None, :, :]
    W2 = jnp.concatenate([W, W1], axis=-1)
    we1 = jnp.concatenate([p["we1a"], p["we1b"]], axis=0)
    h = jax.nn.relu(W2 @ we1 + p["be1"])
    Wn = jax.nn.relu(h @ p["we2"] + p["be2"])
    denom = jnp.maximum(jnp.sum(jnp.abs(A), axis=2, keepdims=True), 1e-12)
    An = A / denom
    x1 = jax.nn.relu(jax.nn.relu(x @ p["wn1"] + p["bn1"]) @ p["wn2"] + p["bn2"])
    xs = jax.nn.relu(jax.nn.relu(x @ p["ws1"] + p["bs1"]) @ p["ws2"] + p["bs2"])
    x2 = jnp.sum(An[..., None] * Wn * x1[:, None, :, :], axis=2) + xs
    return Wn, x2


if __name__ == "__main__":
    # Small synthetic config: in_node_features=32, in_edge_features=16,
    # out_node_features=out_edge_features=32, sk_channel=0, edge_emb=True.
    b, n = 2, 32
    Fin, Ein = 32, 16
    F = Eout = 32

    key = jax.random.PRNGKey(0)
    keys = jax.random.split(key, 20)

    A = (jax.random.uniform(keys[0], (b, n, n)) > 0.5).astype(jnp.float32)
    # Edge-feature stream handed to the kernel in bf16 (no wrapper-side cast pass).
    W = jax.random.normal(keys[1], (b, n, n, Ein), jnp.float32).astype(jnp.bfloat16)
    x = jax.random.normal(keys[2], (b, n, Fin), jnp.float32)

    def init_w(kk, shape):
        return (0.1 * jax.random.normal(kk, shape)).astype(jnp.float32)

    params = {
        # e_func layer 1, split into the W part and the (A*x) part of the concat
        "we1a": init_w(keys[3], (Ein, Eout)),
        "we1b": init_w(keys[4], (Fin, Eout)),
        "be1":  init_w(keys[5], (1, Eout)),
        "we2":  init_w(keys[6], (Eout, Eout)),
        "be2":  init_w(keys[7], (1, Eout)),
        # n_func
        "wn1":  init_w(keys[8], (Fin, F)),
        "bn1":  init_w(keys[9], (1, F)),
        "wn2":  init_w(keys[10], (F, F)),
        "bn2":  init_w(keys[11], (1, F)),
        # n_self_func
        "ws1":  init_w(keys[12], (Fin, F)),
        "bs1":  init_w(keys[13], (1, F)),
        "ws2":  init_w(keys[14], (F, F)),
        "bs2":  init_w(keys[15], (1, F)),
    }

    W_new, x_new = jax.block_until_ready(gnn_layer_jit(A, W, x, params))
    W_ref, x_ref_out = reference(A, W.astype(jnp.float32), x, params)

    assert W_new.shape == (b, n, n, Eout) and W_new.dtype == jnp.bfloat16
    assert x_new.shape == (b, n, F) and x_new.dtype == jnp.float32
    # bf16 edge streams / MXU operands => relaxed tolerances vs. the f32 reference.
    assert jnp.allclose(W_new.astype(jnp.float32), W_ref, atol=5e-2, rtol=5e-2)
    assert jnp.allclose(x_new, x_ref_out, atol=5e-2, rtol=5e-2)
    print("KERNEL_OK")
</pallas_src>

<mosaic_0001>
module attributes {stable_mosaic.version = 11 : i64} {
  func.func @kernel(%arg0: i32, %arg1: i32, %arg2: memref<1x4x16x8xf32, #tpu.memory_space<vmem>>, %arg3: memref<1x16x8x64xbf16, #tpu.memory_space<vmem>>, %arg4: memref<1x8x128xf32, #tpu.memory_space<vmem>>, %arg5: memref<1x16x32xf32, #tpu.memory_space<vmem>>, %arg6: memref<64x128xbf16, #tpu.memory_space<vmem>>, %arg7: memref<128x128xf32, #tpu.memory_space<vmem>>, %arg8: memref<1x128xf32, #tpu.memory_space<vmem>>, %arg9: memref<128x128xbf16, #tpu.memory_space<vmem>>, %arg10: memref<1x128xf32, #tpu.memory_space<vmem>>, %arg11: memref<128x128xf32, #tpu.memory_space<vmem>>, %arg12: memref<1x128xf32, #tpu.memory_space<vmem>>, %arg13: memref<128x128xf32, #tpu.memory_space<vmem>>, %arg14: memref<1x128xf32, #tpu.memory_space<vmem>>, %arg15: memref<32x32xf32, #tpu.memory_space<vmem>>, %arg16: memref<1x32xf32, #tpu.memory_space<vmem>>, %arg17: memref<32x32xf32, #tpu.memory_space<vmem>>, %arg18: memref<1x32xf32, #tpu.memory_space<vmem>>, %arg19: memref<1x16x8x128xbf16, #tpu.memory_space<vmem>>, %arg20: memref<1x16x32xf32, #tpu.memory_space<vmem>>) attributes {dimension_semantics = [#tpu.dimension_semantics<parallel>, #tpu.dimension_semantics<parallel>], iteration_bounds = array<i64: 2, 2>, scalar_prefetch = 0 : i64, scratch_operands = 0 : i64, tpu.core_type = #tpu.core_type<tc>, window_params = [{transform_indices = @transform_0, window_bounds = array<i64: 1, 4, 16, 8>}, {transform_indices = @transform_1, window_bounds = array<i64: 1, 16, 8, 64>}, {transform_indices = @transform_2, window_bounds = array<i64: 1, 8, 128>}, {transform_indices = @transform_3, window_bounds = array<i64: 1, 16, 32>}, {pipeline_mode = #tpu.pipeline_mode<synchronous>, transform_indices = @transform_4, window_bounds = array<i64: 64, 128>}, {pipeline_mode = #tpu.pipeline_mode<synchronous>, transform_indices = @transform_5, window_bounds = array<i64: 128, 128>}, {pipeline_mode = #tpu.pipeline_mode<synchronous>, transform_indices = @transform_6, window_bounds = array<i64: 1, 128>}, {pipeline_mode = #tpu.pipeline_mode<synchronous>, transform_indices = @transform_7, window_bounds = array<i64: 128, 128>}, {pipeline_mode = #tpu.pipeline_mode<synchronous>, transform_indices = @transform_8, window_bounds = array<i64: 1, 128>}, {pipeline_mode = #tpu.pipeline_mode<synchronous>, transform_indices = @transform_9, window_bounds = array<i64: 128, 128>}, {pipeline_mode = #tpu.pipeline_mode<synchronous>, transform_indices = @transform_10, window_bounds = array<i64: 1, 128>}, {pipeline_mode = #tpu.pipeline_mode<synchronous>, transform_indices = @transform_11, window_bounds = array<i64: 128, 128>}, {pipeline_mode = #tpu.pipeline_mode<synchronous>, transform_indices = @transform_12, window_bounds = array<i64: 1, 128>}, {pipeline_mode = #tpu.pipeline_mode<synchronous>, transform_indices = @transform_13, window_bounds = array<i64: 32, 32>}, {pipeline_mode = #tpu.pipeline_mode<synchronous>, transform_indices = @transform_14, window_bounds = array<i64: 1, 32>}, {pipeline_mode = #tpu.pipeline_mode<synchronous>, transform_indices = @transform_15, window_bounds = array<i64: 32, 32>}, {pipeline_mode = #tpu.pipeline_mode<synchronous>, transform_indices = @transform_16, window_bounds = array<i64: 1, 32>}, {transform_indices = @transform_17, window_bounds = array<i64: 1, 16, 8, 128>}, {transform_indices = @transform_18, window_bounds = array<i64: 1, 16, 32>}]} {
    %c0 = arith.constant 0 : index
    %c0_0 = arith.constant 0 : index
    %0 = vector.load %arg6[%c0, %c0_0] : memref<64x128xbf16, #tpu.memory_space<vmem>>, vector<64x128xbf16>
    %c0_1 = arith.constant 0 : index
    %c0_2 = arith.constant 0 : index
    %1 = vector.load %arg7[%c0_1, %c0_2] : memref<128x128xf32, #tpu.memory_space<vmem>>, vector<128x128xf32>
    %c0_3 = arith.constant 0 : index
    %c0_4 = arith.constant 0 : index
    %2 = vector.load %arg8[%c0_3, %c0_4] : memref<1x128xf32, #tpu.memory_space<vmem>>, vector<1x128xf32>
    %3 = vector.shape_cast %2 : vector<1x128xf32> to vector<128xf32>
    %c0_5 = arith.constant 0 : index
    %c0_6 = arith.constant 0 : index
    %4 = vector.load %arg9[%c0_5, %c0_6] : memref<128x128xbf16, #tpu.memory_space<vmem>>, vector<128x128xbf16>
    %c0_7 = arith.constant 0 : index
    %c0_8 = arith.constant 0 : index
    %5 = vector.load %arg10[%c0_7, %c0_8] : memref<1x128xf32, #tpu.memory_space<vmem>>, vector<1x128xf32>
    %6 = vector.shape_cast %5 : vector<1x128xf32> to vector<128xf32>
    %c0_9 = arith.constant 0 : index
    %c0_10 = arith.constant 0 : index
    %7 = vector.load %arg11[%c0_9, %c0_10] : memref<128x128xf32, #tpu.memory_space<vmem>>, vector<128x128xf32>
    %c0_11 = arith.constant 0 : index
    %c0_12 = arith.constant 0 : index
    %8 = vector.load %arg12[%c0_11, %c0_12] : memref<1x128xf32, #tpu.memory_space<vmem>>, vector<1x128xf32>
    %9 = vector.shape_cast %8 : vector<1x128xf32> to vector<128xf32>
    %c0_13 = arith.constant 0 : index
    %c0_14 = arith.constant 0 : index
    %10 = vector.load %arg13[%c0_13, %c0_14] : memref<128x128xf32, #tpu.memory_space<vmem>>, vector<128x128xf32>
    %c0_15 = arith.constant 0 : index
    %c0_16 = arith.constant 0 : index
    %11 = vector.load %arg14[%c0_15, %c0_16] : memref<1x128xf32, #tpu.memory_space<vmem>>, vector<1x128xf32>
    %12 = vector.shape_cast %11 : vector<1x128xf32> to vector<128xf32>
    %c0_17 = arith.constant 0 : index
    %c0_18 = arith.constant 0 : index
    %13 = vector.load %arg15[%c0_17, %c0_18] : memref<32x32xf32, #tpu.memory_space<vmem>>, vector<32x32xf32>
    %c0_19 = arith.constant 0 : index
    %c0_20 = arith.constant 0 : index
    %14 = vector.load %arg16[%c0_19, %c0_20] : memref<1x32xf32, #tpu.memory_space<vmem>>, vector<1x32xf32>
    %15 = vector.shape_cast %14 : vector<1x32xf32> to vector<32xf32>
    %c0_21 = arith.constant 0 : index
    %c0_22 = arith.constant 0 : index
    %16 = vector.load %arg17[%c0_21, %c0_22] : memref<32x32xf32, #tpu.memory_space<vmem>>, vector<32x32xf32>
    %c0_23 = arith.constant 0 : index
    %c0_24 = arith.constant 0 : index
    %17 = vector.load %arg18[%c0_23, %c0_24] : memref<1x32xf32, #tpu.memory_space<vmem>>, vector<1x32xf32>
    %18 = vector.shape_cast %17 : vector<1x32xf32> to vector<32xf32>
    %c0_25 = arith.constant 0 : index
    %c0_26 = arith.constant 0 : index
    %c0_27 = arith.constant 0 : index
    %19 = vector.load %arg4[%c0_25, %c0_26, %c0_27] : memref<1x8x128xf32, #tpu.memory_space<vmem>>, vector<1x8x128xf32>
    %20 = vector.shape_cast %19 : vector<1x8x128xf32> to vector<8x128xf32>
    %cst = arith.constant dense<0.000000e+00> : vector<8x128xf32>
    %21 = tpu.matmul %20, %1, %cst {dimension_numbers = #tpu.dot_dimension_numbers<[1], [0], [0], [1], [0, 0, 1, 1], [], []>} : vector<8x128xf32>, vector<128x128xf32>, vector<8x128xf32> -> vector<8x128xf32>
    %cst_28 = arith.constant dense<0.000000e+00> : vector<8x128xf32>
    %22 = tpu.matmul %20, %7, %cst_28 {dimension_numbers = #tpu.dot_dimension_numbers<[1], [0], [0], [1], [0, 0, 1, 1], [], []>} : vector<8x128xf32>, vector<128x128xf32>, vector<8x128xf32> -> vector<8x128xf32>
    %23 = vector.shape_cast %9 : vector<128xf32> to vector<1x128xf32>
    %24 = vector.broadcast %23 : vector<1x128xf32> to vector<8x128xf32>
    %25 = arith.addf %22, %24 : vector<8x128xf32>
    %cst_29 = arith.constant 0.000000e+00 : f32
    %26 = vector.broadcast %cst_29 : f32 to vector<8x128xf32>
    %27 = arith.maximumf %25, %26 : vector<8x128xf32>
    %cst_30 = arith.constant dense<0.000000e+00> : vector<8x128xf32>
    %28 = tpu.matmul %27, %10, %cst_30 {dimension_numbers = #tpu.dot_dimension_numbers<[1], [0], [0], [1], [0, 0, 1, 1], [], []>} : vector<8x128xf32>, vector<128x128xf32>, vector<8x128xf32> -> vector<8x128xf32>
    %29 = vector.shape_cast %12 : vector<128xf32> to vector<1x128xf32>
    %30 = vector.broadcast %29 : vector<1x128xf32> to vector<8x128xf32>
    %31 = arith.addf %28, %30 : vector<8x128xf32>
    %cst_31 = arith.constant 0.000000e+00 : f32
    %32 = vector.broadcast %cst_31 : f32 to vector<8x128xf32>
    %33 = arith.maximumf %31, %32 : vector<8x128xf32>
    %c0_32 = arith.constant 0 : index
    %c0_33 = arith.constant 0 : index
    %c0_34 = arith.constant 0 : index
    %34 = vector.load %arg5[%c0_32, %c0_33, %c0_34] : memref<1x16x32xf32, #tpu.memory_space<vmem>>, vector<1x16x32xf32>
    %35 = vector.shape_cast %34 : vector<1x16x32xf32> to vector<16x32xf32>
    %cst_35 = arith.constant dense<0.000000e+00> : vector<16x32xf32>
    %36 = tpu.matmul %35, %13, %cst_35 {dimension_numbers = #tpu.dot_dimension_numbers<[1], [0], [0], [1], [0, 0, 1, 1], [], []>} : vector<16x32xf32>, vector<32x32xf32>, vector<16x32xf32> -> vector<16x32xf32>
    %37 = vector.shape_cast %15 : vector<32xf32> to vector<1x32xf32>
    %38 = vector.broadcast %37 : vector<1x32xf32> to vector<16x32xf32>
    %39 = arith.addf %36, %38 : vector<16x32xf32>
    %cst_36 = arith.constant 0.000000e+00 : f32
    %40 = vector.broadcast %cst_36 : f32 to vector<16x32xf32>
    %41 = arith.maximumf %39, %40 : vector<16x32xf32>
    %cst_37 = arith.constant dense<0.000000e+00> : vector<16x32xf32>
    %42 = tpu.matmul %41, %16, %cst_37 {dimension_numbers = #tpu.dot_dimension_numbers<[1], [0], [0], [1], [0, 0, 1, 1], [], []>} : vector<16x32xf32>, vector<32x32xf32>, vector<16x32xf32> -> vector<16x32xf32>
    %43 = vector.shape_cast %18 : vector<32xf32> to vector<1x32xf32>
    %44 = vector.broadcast %43 : vector<1x32xf32> to vector<16x32xf32>
    %45 = arith.addf %42, %44 : vector<16x32xf32>
    %cst_38 = arith.constant 0.000000e+00 : f32
    %46 = vector.broadcast %cst_38 : f32 to vector<16x32xf32>
    %47 = arith.maximumf %45, %46 : vector<16x32xf32>
    %c0_39 = arith.constant 0 : index
    %c0_40 = arith.constant 0 : index
    %c0_41 = arith.constant 0 : index
    %c0_42 = arith.constant 0 : index
    %48 = vector.load %arg2[%c0_39, %c0_40, %c0_41, %c0_42] : memref<1x4x16x8xf32, #tpu.memory_space<vmem>>, vector<1x1x16x8xf32>
    %49 = vector.shape_cast %48 : vector<1x1x16x8xf32> to vector<16x8xf32>
    %50 = math.absf %49 : vector<16x8xf32>
    %cst_43 = arith.constant dense<0.000000e+00> : vector<16xf32>
    %51 = vector.multi_reduction <add>, %50, %cst_43 [1] : vector<16x8xf32> to vector<16xf32>
    %52 = vector.shape_cast %51 : vector<16xf32> to vector<16x1xf32>
    %53 = vector.shape_cast %49 : vector<16x8xf32> to vector<16x8x1xf32>
    %54 = vector.shape_cast %53 : vector<16x8x1xf32> to vector<16x8x1xf32>
    %55 = vector.broadcast %54 : vector<16x8x1xf32> to vector<16x8x32xf32>
    %c0_44 = arith.constant 0 : index
    %c1 = arith.constant 1 : index
    %c0_45 = arith.constant 0 : index
    %c0_46 = arith.constant 0 : index
    %56 = vector.load %arg2[%c0_44, %c1, %c0_45, %c0_46] : memref<1x4x16x8xf32, #tpu.memory_space<vmem>>, vector<1x1x16x8xf32>
    %57 = vector.shape_cast %56 : vector<1x1x16x8xf32> to vector<16x8xf32>
    %58 = math.absf %57 : vector<16x8xf32>
    %cst_47 = arith.constant dense<0.000000e+00> : vector<16xf32>
    %59 = vector.multi_reduction <add>, %58, %cst_47 [1] : vector<16x8xf32> to vector<16xf32>
    %60 = vector.shape_cast %59 : vector<16xf32> to vector<16x1xf32>
    %61 = arith.addf %52, %60 : vector<16x1xf32>
    %62 = vector.shape_cast %57 : vector<16x8xf32> to vector<16x8x1xf32>
    %63 = vector.shape_cast %62 : vector<16x8x1xf32> to vector<16x8x1xf32>
    %64 = vector.broadcast %63 : vector<16x8x1xf32> to vector<16x8x32xf32>
    %c0_48 = arith.constant 0 : index
    %c2 = arith.constant 2 : index
    %c0_49 = arith.constant 0 : index
    %c0_50 = arith.constant 0 : index
    %65 = vector.load %arg2[%c0_48, %c2, %c0_49, %c0_50] : memref<1x4x16x8xf32, #tpu.memory_space<vmem>>, vector<1x1x16x8xf32>
    %66 = vector.shape_cast %65 : vector<1x1x16x8xf32> to vector<16x8xf32>
    %67 = math.absf %66 : vector<16x8xf32>
    %cst_51 = arith.constant dense<0.000000e+00> : vector<16xf32>
    %68 = vector.multi_reduction <add>, %67, %cst_51 [1] : vector<16x8xf32> to vector<16xf32>
    %69 = vector.shape_cast %68 : vector<16xf32> to vector<16x1xf32>
    %70 = arith.addf %61, %69 : vector<16x1xf32>
    %71 = vector.shape_cast %66 : vector<16x8xf32> to vector<16x8x1xf32>
    %72 = vector.shape_cast %71 : vector<16x8x1xf32> to vector<16x8x1xf32>
    %73 = vector.broadcast %72 : vector<16x8x1xf32> to vector<16x8x32xf32>
    %c0_52 = arith.constant 0 : index
    %c3 = arith.constant 3 : index
    %c0_53 = arith.constant 0 : index
    %c0_54 = arith.constant 0 : index
    %74 = vector.load %arg2[%c0_52, %c3, %c0_53, %c0_54] : memref<1x4x16x8xf32, #tpu.memory_space<vmem>>, vector<1x1x16x8xf32>
    %75 = vector.shape_cast %74 : vector<1x1x16x8xf32> to vector<16x8xf32>
    %76 = math.absf %75 : vector<16x8xf32>
    %cst_55 = arith.constant dense<0.000000e+00> : vector<16xf32>
    %77 = vector.multi_reduction <add>, %76, %cst_55 [1] : vector<16x8xf32> to vector<16xf32>
    %78 = vector.shape_cast %77 : vector<16xf32> to vector<16x1xf32>
    %79 = arith.addf %70, %78 : vector<16x1xf32>
    %80 = vector.shape_cast %75 : vector<16x8xf32> to vector<16x8x1xf32>
    %81 = vector.shape_cast %80 : vector<16x8x1xf32> to vector<16x8x1xf32>
    %82 = vector.broadcast %81 : vector<16x8x1xf32> to vector<16x8x32xf32>
    %83 = tpu.concatenate %55, %64, %73, %82 in 2 : vector<16x8x32xf32>, vector<16x8x32xf32>, vector<16x8x32xf32>, vector<16x8x32xf32> -> vector<16x8x128xf32>
    %c0_56 = arith.constant 0 : index
    %c0_57 = arith.constant 0 : index
    %c0_58 = arith.constant 0 : index
    %c0_59 = arith.constant 0 : index
    %84 = vector.load %arg3[%c0_56, %c0_57, %c0_58, %c0_59] : memref<1x16x8x64xbf16, #tpu.memory_space<vmem>>, vector<1x16x8x64xbf16>
    %85 = vector.shape_cast %84 : vector<1x16x8x64xbf16> to vector<16x8x64xbf16>
    %86 = vector.shape_cast %85 : vector<16x8x64xbf16> to vector<128x64xbf16>
    %cst_60 = arith.constant dense<0.000000e+00> : vector<128x128xf32>
    %87 = tpu.matmul %86, %0, %cst_60 {dimension_numbers = #tpu.dot_dimension_numbers<[1], [0], [0], [1], [0, 0, 1, 1], [], []>} : vector<128x64xbf16>, vector<64x128xbf16>, vector<128x128xf32> -> vector<128x128xf32>
    %88 = vector.shape_cast %87 : vector<128x128xf32> to vector<16x8x128xf32>
    %89 = vector.shape_cast %21 : vector<8x128xf32> to vector<1x8x128xf32>
    %90 = vector.broadcast %89 : vector<1x8x128xf32> to vector<16x8x128xf32>
    %91 = arith.mulf %83, %90 : vector<16x8x128xf32>
    %92 = arith.addf %88, %91 : vector<16x8x128xf32>
    %93 = vector.shape_cast %3 : vector<128xf32> to vector<1x1x128xf32>
    %94 = vector.broadcast %93 : vector<1x1x128xf32> to vector<16x8x128xf32>
    %95 = arith.addf %92, %94 : vector<16x8x128xf32>
    %cst_61 = arith.constant 0.000000e+00 : f32
    %96 = vector.broadcast %cst_61 : f32 to vector<16x8x128xf32>
    %97 = arith.maximumf %95, %96 : vector<16x8x128xf32>
    %98 = vector.shape_cast %97 : vector<16x8x128xf32> to vector<128x128xf32>
    %99 = arith.truncf %98 : vector<128x128xf32> to vector<128x128xbf16>
    %cst_62 = arith.constant dense<0.000000e+00> : vector<128x128xf32>
    %100 = tpu.matmul %99, %4, %cst_62 {dimension_numbers = #tpu.dot_dimension_numbers<[1], [0], [0], [1], [0, 0, 1, 1], [], []>} : vector<128x128xbf16>, vector<128x128xbf16>, vector<128x128xf32> -> vector<128x128xf32>
    %101 = vector.shape_cast %6 : vector<128xf32> to vector<1x128xf32>
    %102 = vector.broadcast %101 : vector<1x128xf32> to vector<128x128xf32>
    %103 = arith.addf %100, %102 : vector<128x128xf32>
    %cst_63 = arith.constant 0.000000e+00 : f32
    %104 = vector.broadcast %cst_63 : f32 to vector<128x128xf32>
    %105 = arith.maximumf %103, %104 : vector<128x128xf32>
    %106 = vector.shape_cast %105 : vector<128x128xf32> to vector<16x8x128xf32>
    %107 = arith.truncf %106 : vector<16x8x128xf32> to vector<16x8x128xbf16>
    %c0_64 = arith.constant 0 : index
    %c0_65 = arith.constant 0 : index
    %c0_66 = arith.constant 0 : index
    %c0_67 = arith.constant 0 : index
    %108 = vector.load %arg19[%c0_64, %c0_65, %c0_66, %c0_67] : memref<1x16x8x128xbf16, #tpu.memory_space<vmem>>, vector<1x16x8x128xbf16>
    %109 = vector.shape_cast %108 : vector<1x16x8x128xbf16> to vector<16x8x128xbf16>
    %110 = vector.shape_cast %107 : vector<16x8x128xbf16> to vector<1x16x8x128xbf16>
    tpu.vector_store %arg19[%c0_64, %c0_65, %c0_66, %c0_67], %110 {strides = array<i32>} : memref<1x16x8x128xbf16, #tpu.memory_space<vmem>>, vector<1x16x8x128xbf16>,
    %111 = arith.mulf %83, %106 : vector<16x8x128xf32>
    %112 = vector.shape_cast %33 : vector<8x128xf32> to vector<1x8x128xf32>
    %113 = vector.broadcast %112 : vector<1x8x128xf32> to vector<16x8x128xf32>
    %114 = arith.mulf %111, %113 : vector<16x8x128xf32>
    %cst_68 = arith.constant dense<0.000000e+00> : vector<16x128xf32>
    %115 = vector.multi_reduction <add>, %114, %cst_68 [1] : vector<16x8x128xf32> to vector<16x128xf32>
    %116 = vector.extract_strided_slice %115 {offsets = [0, 0], sizes = [16, 32], strides = [1, 1]} : vector<16x128xf32> to vector<16x32xf32>
    %117 = vector.extract_strided_slice %115 {offsets = [0, 32], sizes = [16, 32], strides = [1, 1]} : vector<16x128xf32> to vector<16x32xf32>
    %118 = arith.addf %116, %117 : vector<16x32xf32>
    %119 = vector.extract_strided_slice %115 {offsets = [0, 64], sizes = [16, 32], strides = [1, 1]} : vector<16x128xf32> to vector<16x32xf32>
    %120 = arith.addf %118, %119 : vector<16x32xf32>
    %121 = vector.extract_strided_slice %115 {offsets = [0, 96], sizes = [16, 32], strides = [1, 1]} : vector<16x128xf32> to vector<16x32xf32>
    %122 = arith.addf %120, %121 : vector<16x32xf32>
    %cst_69 = arith.constant 9.99999996E-13 : f32
    %123 = vector.broadcast %cst_69 : f32 to vector<16x1xf32>
    %124 = arith.maximumf %79, %123 : vector<16x1xf32>
    %cst_70 = arith.constant 1.000000e+00 : f32
    %125 = vector.broadcast %cst_70 : f32 to vector<16x1xf32>
    %126 = arith.divf %125, %124 : vector<16x1xf32>
    %127 = vector.broadcast %126 : vector<16x1xf32> to vector<16x32xf32>
    %128 = arith.mulf %127, %122 : vector<16x32xf32>
    %129 = arith.addf %128, %47 : vector<16x32xf32>
    %c0_71 = arith.constant 0 : index
    %c0_72 = arith.constant 0 : index
    %c0_73 = arith.constant 0 : index
    %130 = vector.load %arg20[%c0_71, %c0_72, %c0_73] : memref<1x16x32xf32, #tpu.memory_space<vmem>>, vector<1x16x32xf32>
    %131 = vector.shape_cast %130 : vector<1x16x32xf32> to vector<16x32xf32>
    %132 = vector.shape_cast %129 : vector<16x32xf32> to vector<1x16x32xf32>
    tpu.vector_store %arg20[%c0_71, %c0_72, %c0_73], %132 {strides = array<i32>} : memref<1x16x32xf32, #tpu.memory_space<vmem>>, vector<1x16x32xf32>,
    return
  }
  func.func @transform_0(%arg0: i32, %arg1: i32) -> (i32, i32, i32, i32) {
    %c0_i32 = arith.constant 0 : i32
    %c0_i32_0 = arith.constant 0 : i32
    %c0_i32_1 = arith.constant 0 : i32
    return %arg0, %c0_i32, %arg1, %c0_i32_0 : i32, i32, i32, i32
  }
  func.func @transform_1(%arg0: i32, %arg1: i32) -> (i32, i32, i32, i32) {
    %c0_i32 = arith.constant 0 : i32
    %c0_i32_0 = arith.constant 0 : i32
    %c0_i32_1 = arith.constant 0 : i32
    return %arg0, %arg1, %c0_i32, %c0_i32_0 : i32, i32, i32, i32
  }
  func.func @transform_2(%arg0: i32, %arg1: i32) -> (i32, i32, i32) {
    %c0_i32 = arith.constant 0 : i32
    %c0_i32_0 = arith.constant 0 : i32
    %c0_i32_1 = arith.constant 0 : i32
    return %arg0, %c0_i32, %c0_i32_0 : i32, i32, i32
  }
  func.func @transform_3(%arg0: i32, %arg1: i32) -> (i32, i32, i32) {
    %c0_i32 = arith.constant 0 : i32
    %c0_i32_0 = arith.constant 0 : i32
    return %arg0, %arg1, %c0_i32 : i32, i32, i32
  }
  func.func @transform_4(%arg0: i32, %arg1: i32) -> (i32, i32) {
    %c0_i32 = arith.constant 0 : i32
    %c0_i32_0 = arith.constant 0 : i32
    %c0_i32_1 = arith.constant 0 : i32
    return %c0_i32, %c0_i32_0 : i32, i32
  }
  func.func @transform_5(%arg0: i32, %arg1: i32) -> (i32, i32) {
    %c0_i32 = arith.constant 0 : i32
    %c0_i32_0 = arith.constant 0 : i32
    %c0_i32_1 = arith.constant 0 : i32
    return %c0_i32, %c0_i32_0 : i32, i32
  }
  func.func @transform_6(%arg0: i32, %arg1: i32) -> (i32, i32) {
    %c0_i32 = arith.constant 0 : i32
    %c0_i32_0 = arith.constant 0 : i32
    %c0_i32_1 = arith.constant 0 : i32
    return %c0_i32, %c0_i32_0 : i32, i32
  }
  func.func @transform_7(%arg0: i32, %arg1: i32) -> (i32, i32) {
    %c0_i32 = arith.constant 0 : i32
    %c0_i32_0 = arith.constant 0 : i32
    %c0_i32_1 = arith.constant 0 : i32
    return %c0_i32, %c0_i32_0 : i32, i32
  }
  func.func @transform_8(%arg0: i32, %arg1: i32) -> (i32, i32) {
    %c0_i32 = arith.constant 0 : i32
    %c0_i32_0 = arith.constant 0 : i32
    %c0_i32_1 = arith.constant 0 : i32
    return %c0_i32, %c0_i32_0 : i32, i32
  }
  func.func @transform_9(%arg0: i32, %arg1: i32) -> (i32, i32) {
    %c0_i32 = arith.constant 0 : i32
    %c0_i32_0 = arith.constant 0 : i32
    %c0_i32_1 = arith.constant 0 : i32
    return %c0_i32, %c0_i32_0 : i32, i32
  }
  func.func @transform_10(%arg0: i32, %arg1: i32) -> (i32, i32) {
    %c0_i32 = arith.constant 0 : i32
    %c0_i32_0 = arith.constant 0 : i32
    %c0_i32_1 = arith.constant 0 : i32
    return %c0_i32, %c0_i32_0 : i32, i32
  }
  func.func @transform_11(%arg0: i32, %arg1: i32) -> (i32, i32) {
    %c0_i32 = arith.constant 0 : i32
    %c0_i32_0 = arith.constant 0 : i32
    %c0_i32_1 = arith.constant 0 : i32
    return %c0_i32, %c0_i32_0 : i32, i32
  }
  func.func @transform_12(%arg0: i32, %arg1: i32) -> (i32, i32) {
    %c0_i32 = arith.constant 0 : i32
    %c0_i32_0 = arith.constant 0 : i32
    %c0_i32_1 = arith.constant 0 : i32
    return %c0_i32, %c0_i32_0 : i32, i32
  }
  func.func @transform_13(%arg0: i32, %arg1: i32) -> (i32, i32) {
    %c0_i32 = arith.constant 0 : i32
    %c0_i32_0 = arith.constant 0 : i32
    %c0_i32_1 = arith.constant 0 : i32
    return %c0_i32, %c0_i32_0 : i32, i32
  }
  func.func @transform_14(%arg0: i32, %arg1: i32) -> (i32, i32) {
    %c0_i32 = arith.constant 0 : i32
    %c0_i32_0 = arith.constant 0 : i32
    %c0_i32_1 = arith.constant 0 : i32
    return %c0_i32, %c0_i32_0 : i32, i32
  }
  func.func @transform_15(%arg0: i32, %arg1: i32) -> (i32, i32) {
    %c0_i32 = arith.constant 0 : i32
    %c0_i32_0 = arith.constant 0 : i32
    %c0_i32_1 = arith.constant 0 : i32
    return %c0_i32, %c0_i32_0 : i32, i32
  }
  func.func @transform_16(%arg0: i32, %arg1: i32) -> (i32, i32) {
    %c0_i32 = arith.constant 0 : i32
    %c0_i32_0 = arith.constant 0 : i32
    %c0_i32_1 = arith.constant 0 : i32
    return %c0_i32, %c0_i32_0 : i32, i32
  }
  func.func @transform_17(%arg0: i32, %arg1: i32) -> (i32, i32, i32, i32) {
    %c0_i32 = arith.constant 0 : i32
    %c0_i32_0 = arith.constant 0 : i32
    %c0_i32_1 = arith.constant 0 : i32
    return %arg0, %arg1, %c0_i32, %c0_i32_0 : i32, i32, i32, i32
  }
  func.func @transform_18(%arg0: i32, %arg1: i32) -> (i32, i32, i32) {
    %c0_i32 = arith.constant 0 : i32
    %c0_i32_0 = arith.constant 0 : i32
    return %arg0, %arg1, %c0_i32 : i32, i32, i32
  }
}

</mosaic_0001>

<bundles_post_ra>
// kernel: gnn_layer.1
= control target key start
LH: loop header
LB: loop body
LE: loop exit
PB: predicated region body
PF: predicated region fallthrough
CT: control target
= control target key end

     0   :  { %s4069_s0 = inlined_call_operand.vmem [shape: f32[2,4,32,8], index: 0, kind: input, shape index: {}]   ;;  %s4070_s1 = inlined_call_operand.vmem [shape: bf16[2,32,8,64], index: 1, kind: input, shape index: {}]   ;;  %s4071_s2 = inlined_call_operand.vmem [shape: f32[2,8,128], index: 2, kind: input, shape index: {}]   ;;  %s4072_s3 = inlined_call_operand.vmem [shape: f32[2,32,32], index: 3, kind: input, shape index: {}]   ;;  %s4073_s4 = inlined_call_operand.vmem [shape: bf16[64,128], index: 4, kind: input, shape index: {}]   ;;  %s4074_s5 = inlined_call_operand.vmem [shape: f32[128,128], index: 5, kind: input, shape index: {}]   ;;  %s4075_s6 = inlined_call_operand.vmem [shape: f32[1,128], index: 6, kind: input, shape index: {}]   ;;  %s4076_s7 = inlined_call_operand.vmem [shape: bf16[128,128], index: 7, kind: input, shape index: {}]   ;;  %s4077_s8 = inlined_call_operand.vmem [shape: f32[1,128], index: 8, kind: input, shape index: {}]   ;;  %s4078_s9 = inlined_call_operand.vmem [shape: f32[128,128], index: 9, kind: input, shape index: {}]   ;;  %s4079_s10 = inlined_call_operand.vmem [shape: f32[1,128], index: 10, kind: input, shape index: {}]   ;;  %s4080_s11 = inlined_call_operand.vmem [shape: f32[128,128], index: 11, kind: input, shape index: {}]   ;;  %s4081_s12 = inlined_call_operand.vmem [shape: f32[1,128], index: 12, kind: input, shape index: {}]   ;;  %s4082_s13 = inlined_call_operand.vmem [shape: f32[32,32], index: 13, kind: input, shape index: {}]   ;;  %s4083_s14 = inlined_call_operand.vmem [shape: f32[1,32], index: 14, kind: input, shape index: {}]   ;;  %s4084_s15 = inlined_call_operand.vmem [shape: f32[32,32], index: 15, kind: input, shape index: {}]   ;;  %s4085_s16 = inlined_call_operand.vmem [shape: f32[1,32], index: 16, kind: input, shape index: {}]   ;;  %s4086_s17 = inlined_call_operand.vmem [shape: bf16[2,32,8,128], index: 17, kind: output, shape index: {0}]   ;;  %s4087_s18 = inlined_call_operand.hbm [shape: f32[2,32,32], index: 18, kind: output, shape index: {1}]  }
   0x1   :  { %4097 = sst [smem:[#allocation14_spill]] %s4069_s0 }
   0x2   :  { %4098 = sst [smem:[#allocation15_spill]] %s4070_s1 }
   0x3   :  { %4099 = sst [smem:[#allocation16_spill]] %s4071_s2 }
   0x4   :  { %4100 = sst [smem:[#allocation17_spill]] %s4077_s8 }
   0x5   :  { %4101 = sst [smem:[#allocation18_spill]] %s4082_s13 }
   0x6   :  { %4102 = sst [smem:[#allocation19_spill]] %s4085_s16 }
   0x7   :  { %4103 = sst [smem:[#allocation20_spill]] %s4086_s17 }
   0x8   :  { %4104 = sst [smem:[#allocation21_spill]] %s4087_s18 }
   0x9   :  { %24 = vsyncpa [#allocation4], 0 }
   0xa   :  { %26 = vsyncpa [#allocation4 + $0x1], 0  ;;  %s3039_s27 = smov 0   ;;  %s3041_s28 = smov 0  }
   0xb   :  { %s3043_s29 = smov 0   ;;  %s3045_s30 = smov 0  }
   0xc   :  { %s3047_s0 = smov 0   ;;  %s3049_s19 = smov 0  }
   0xd   :  { %s3051_s1 = smov 0   ;;  %s3053_s20 = smov 0  }
   0xe LB: > { %4105 = sst [smem:[#allocation6_spill]] %s2909_s27  ;;  %s2550_s21 = sadd.s32 4294967295, %s2937_s20   ;;  %s2937_s20 = sphi %s3053_s20, %s32_s20   ;;  %s2933_s1 = sphi %s3051_s1, %s4133_s1   ;;  %s2929_s19 = sphi %s3049_s19, %s4132_s19   ;;  %s2925_s0 = sphi %s3047_s0, %s4131_s0   ;;  %s2921_s30 = sphi %s3045_s30, %s4130_s30   ;;  %s2917_s29 = sphi %s3043_s29, %s4136_s29   ;;  %s2913_s28 = sphi %s3041_s28, %s4135_s28   ;;  %s2909_s27 = sphi %s3039_s27, %s4134_s27  }
   0xf   : > { %4106 = sst [smem:[#allocation7_spill]] %s2929_s19  ;;  %s2551_s22 = sadd.s32 4294967294, %s2937_s20  }
  0x10   : > { %4107 = sst [smem:[#allocation8_spill]] %s2933_s1  ;;  %s41_s2 = sadd.s32 1, %s2929_s19 }
  0x11   : > { %p42_p0 = scmp.ge.s32.totalorder %s41_s2, 2  ;;  %s44_s23 = sadd.s32 1, %s2933_s1 }
  0x12   : > { %p60_p1 = scmp.ne.s32.totalorder %s2917_s29, %s2913_s28  ;;  %p61_p2 = scmp.eq.s32.totalorder %s2937_s20, 0 }
  0x13   : > { %s4138_s2 = smov (%p42_p0, %s41_s2), 0  ;;  %s4140_s23 = smov (!%p42_p0, %s44_s23), %s2933_s1 }
  0x14   : > { %4108 = sst [smem:[#allocation9_spill]] %s4138_s2  ;;  %s49_s24 = ssub.s32 %s2929_s19, %s4138_s2 }
  0x15   : > { %p3091_p3 = por %p61_p2, %p60_p1  ;;  %p46_p4 = scmp.ge.s32.totalorder %s4140_s23, 2 }
  0x16   : > { %p475_p5 = scmp.eq.s32.totalorder %s2550_s21, 3  ;;  %p480_p6 = scmp.ne.s32.totalorder %s2913_s28, %s2909_s27 }
  0x17   : > { %p481_p7 = scmp.eq.s32.totalorder %s2551_s22, 3  ;;  %s4142_s23 = smov (%p46_p4, %s4140_s23), 0 }
  0x18   : > { %4110 = sst [smem:[#allocation10_spill]] %s4142_s23  ;;  %p3099_p8 = por %p475_p5, %p60_p1 }
  0x19   : > { %p3103_p9 = por %p481_p7, %p480_p6  ;;  %s48_s2 = ssub.s32 %s2933_s1, %s4142_s23 }
  0x1a   : > { %s4111_s26 = scalar_select %p3099_p8, 1, 0 }
  0x1b   : > { %s4113_s18 = scalar_select %p3103_p9, 1, 0 }
  0x1c   : > { %4112 = sst [smem:[#allocation11_spill]] %s4111_s26  ;;  %s50_s16 = sor.u32 %s49_s24, %s48_s2 }
  0x1d   : > { %4114 = sst [smem:[#allocation12_spill]] %s4113_s18  ;;  %s53_s17 = sadd.s32 1, %s2917_s29 }
  0x1e   : > { %p51_p10 = scmp.eq.s32.totalorder %s50_s16, 0  ;;  %p2553_p11 = scmp.ge.s32.totalorder %s2937_s20, 4 }
  0x20   : > { %s3111_s8 = scalar_select %p51_p10, %s2917_s29, %s53_s17  }
  0x21   : > { %536 = sbr.rel (%p2553_p11) target bundleno = 56 (0x38), region = 68 }
  0x22   : > { %4115 = sst [smem:[#allocation13_spill]] %s3111_s8 }
  0x26   : > { %539 = sbr.rel (!%p3091_p3) target bundleno = 56 (0x38), region = 72  ;;  %s541_s21 = sand.u32 (%p3091_p3), 1, %s2917_s29  }
  0x27   : > { %s2555_s22 = sshll.u32 (%p3091_p3), %s2929_s19, 1  ;;  %s2554_s27 = sshll.u32 (%p3091_p3), %s541_s21, 6 }
  0x28   : > { %s2556_s26 = sshll.u32 (%p3091_p3), %s2933_s1, 4  ;;  %s4116_s16 = sld [smem:[#allocation14_spill]] (%p3091_p3) }
  0x29   : > { %s546_s18 = sadd.s32 (%p3091_p3), %s2556_s26, %s2555_s22  ;;  %s543_s8 = scalar_lea.vmem (%p3091_p3), [#allocation2], %s2554_s27 }
  0x2a   : > { %s2557_s23 = sshll.u32 (%p3091_p3), %s546_s18, 3 }
  0x2e   : > { %s548_s17 = scalar_lea.vmem %s4116_s16, %s2557_s23 }
  0x2f   : > { %v591_v0 = vld [vmem:[%s548_s17] sm:$0xff]  ;;  %v593_v1 = vld [vmem:[%s548_s17 + $0x8] sm:$0xff] }
  0x30   : > { %v595_v2 = vld [vmem:[%s548_s17 + $0x20] sm:$0xff]  ;;  %592 = vst [vmem:[%s543_s8] sm:$0xff] %v591_v0  ;;  %v597_v3 = vld [vmem:[%s548_s17 + $0x28] sm:$0xff] }
  0x31   : > { %594 = vst [vmem:[%s543_s8 + $0x8] sm:$0xff] %v593_v1  ;;  %v599_v4 = vld [vmem:[%s548_s17 + $0x40] sm:$0xff]  ;;  %v601_v5 = vld [vmem:[%s548_s17 + $0x48] sm:$0xff] }
  0x32   : > { %596 = vst [vmem:[%s543_s8 + $0x10] sm:$0xff] %v595_v2  ;;  %v603_v6 = vld [vmem:[%s548_s17 + $0x60] sm:$0xff]  ;;  %v605_v7 = vld [vmem:[%s548_s17 + $0x68] sm:$0xff] }
  0x33   : > { %598 = vst [vmem:[%s543_s8 + $0x18] sm:$0xff] %v597_v3 }
  0x34   : > { %600 = vst [vmem:[%s543_s8 + $0x20] sm:$0xff] %v599_v4 }
  0x35   : > { %602 = vst [vmem:[%s543_s8 + $0x28] sm:$0xff] %v601_v5 }
  0x36   : > { %604 = vst [vmem:[%s543_s8 + $0x30] sm:$0xff] %v603_v6 }
  0x37   : > { %606 = vst [vmem:[%s543_s8 + $0x38] sm:$0xff] %v605_v7 }
  0x38 PF: > { %p2558_p12 = scmp.ge.s32.totalorder %s2937_s20, 1  ;;  %p644_p13 = scmp.lt.s32.totalorder %s2937_s20, 5 }
  0x3a   : > { %p645_p0 = pnand %p2558_p12, %p644_p13 }
  0x3b   : > { %s4117_s13 = sld [smem:[#allocation18_spill]] (!%p645_p0)  ;;  %s3134_s21 = sand.u32 (!%p645_p0), 1, %s2913_s28  }
  0x3c   : > { %648 = sbr.rel (%p645_p0) target bundleno = 787 (0x313), region = 122  ;;  %s2559_s24 = sshll.u32 (!%p645_p0), %s3134_s21, 6 }
  0x3d   : > { %p737_p1 = scmp.lt.s32.totalorder (!%p645_p0), %s2925_s0, 1  ;;  %s3150_s26 = scalar_lea.vmem (!%p645_p0), [#allocation2], %s2559_s24 }
  0x3e   : > { %s3179_s17 = sshll.u32 (!%p645_p0), %s2921_s30, 1  ;;  %s4118_s19 = sld [smem:[#allocation16_spill]] (!%p645_p0) }
  0x3f   : > { %p753_p2 = scmp.lt.s32.totalorder (!%p645_p0), %s3179_s17, 3  ;;  %s4122_s1 = sld [smem:[#allocation19_spill]] (!%p645_p0) }
  0x40   : > { %s4125_s22 = sld [smem:[#allocation21_spill]] (!%p645_p0) }
  0x41   : > { %v829_v8 = vld [vmem:[%s4078_s9 + $0x78] sm:$0xff]  ;;  %v828_v10 = vld [vmem:[%s4078_s9 + $0x70] sm:$0xff]  ;;  %v1010_v11 = vlaneseq  ;;  %v827_v13 = vld [vmem:[%s4078_s9 + $0x68] sm:$0xff]  ;;  %vm1002_vm0 = vcmask 64512   ;;  %s3170_s2 = scalar_select %p737_p1, %s2925_s0, 1  ;;  %vm932_vm1 = vcmask 261120  }
  0x42   : > { %v851_v9 = vld [vmem:[%s4117_s13 + $0x18] sm:$0xff]  ;;  %882 = vmatpush.msra.mxu1 %v829_v8  ;;  %v850_v12 = vld [vmem:[%s4117_s13 + $0x10] sm:$0xff]  ;;  %v849_v14 = vld [vmem:[%s4117_s13 + $0x8] sm:$0xff]  ;;  %s754_s25 = scalar_select %p753_p2, %s3179_s17, 3  ;;  %vm1512_vm2 = vcmask 523264   ;;  %vm1529_vm3 = vcmask 785408  }
  0x43   : > { %951 = vmatpush.msra.mxu3 %v851_v9  ;;  %v826_v15 = vld [vmem:[%s4078_s9 + $0x60] sm:$0xff]  ;;  %v1011_v16 = vshrl.u32 %v1010_v11, 7  ;;  %v3153_v17 = vld [vmem:[%s3150_s26 + $0x18] sm:$0xff]  ;;  %v3156_v18 = vld [vmem:[%s3150_s26 + $0x10] sm:$0xff]  ;;  %s2566_s23 = sshll.u32 %s3170_s2, 2  ;;  %vm2307_vm4 = vcmask 1041409  }
  0x44   : > { %883 = vmatpush.msra.mxu1 %v828_v10  ;;  %v3159_v19 = vld [vmem:[%s3150_s26] sm:$0xff]  ;;  %v1125_v20 = vand.u32 2147483647, %v3153_v17  ;;  %v1124_v21 = vand.u32 2147483647, %v3156_v18  ;;  %v825_v27 = vld [vmem:[%s4078_s9 + $0x58] sm:$0xff]  ;;  %s756_s18 = sadd.s32 %s2566_s23, %s754_s25 }
  0x45   : > { %952 = vmatpush.msra.mxu3 %v850_v12  ;;  %v1000_v22 = vand.u32 2147483647, %v3159_v19  ;;  %2830 = vset.pattern.permute.xlu0 %v1011_v16  ;;  %v848_v23 = vld [vmem:[%s4117_s13] sm:$0xff]  ;;  %v3187_v30 = vld [vmem:[%s3150_s26 + $0x28] sm:$0xff]  ;;  %v824_v32 = vld [vmem:[%s4078_s9 + $0x50] sm:$0xff]  ;;  %s2567_s27 = sshll.u32 %s756_s18, 3 }
  0x46   : > { %2831 = vset.pattern.permute.xlu2 %v1011_v16  ;;  %884 = vmatpush.msra.mxu1 %v827_v13  ;;  %v1129_v24 = vsel %vm1002_vm0, %v1125_v20, 0.0  ;;  %v1126_v25 = vsel %vm1002_vm0, %v1124_v21, 0.0  ;;  %v3182_v28 = vld [vmem:[%s3150_s26 + $0x20] sm:$0xff]  ;;  %v3190_v31 = vld [vmem:[%s3150_s26 + $0x8] sm:$0xff]  ;;  %v1250_v33 = vand.u32 2147483647, %v3187_v30  ;;  %s758_s8 = scalar_lea.vmem %s4072_s3, %s2567_s27 }
  0x47   : > { %953 = vmatpush.msra.mxu3 %v849_v14  ;;  %v1003_v26 = vsel %vm1002_vm0, %v1000_v22, 0.0  ;;  %2832 = vset.pattern.permute.xlu1 %v1011_v16  ;;  %v1249_v29 = vand.u32 2147483647, %v3182_v28  ;;  %v823_v34 = vld [vmem:[%s4078_s9 + $0x48] sm:$0xff]  ;;  %v1001_v35 = vand.u32 2147483647, %v3190_v31 }
  0x48   : > { %885 = vmatpush.msra.mxu1 %v826_v15  ;;  %1130 = vadd.xlane.f32.xlu2 %v1129_v24  ;;  %v822_v36 = vld [vmem:[%s4078_s9 + $0x40] sm:$0xff]  ;;  %v1254_v38 = vsel %vm1002_vm0, %v1250_v33, 0.0  ;;  %v821_v40 = vld [vmem:[%s4078_s9 + $0x38] sm:$0xff]  ;;  %v820_v42 = vld [vmem:[%s4078_s9 + $0x30] sm:$0xff]  ;;  %s2564_s27 = sshll.u32 %s3170_s2, 3  ;;  %v1037_v51 = vperm.slane %v3159_v19, 4 }
  0x49   : > { %1127 = vadd.xlane.f32.xlu1 %v1126_v25  ;;  %1004 = vadd.xlane.f32.xlu0 %v1003_v26  ;;  %v1251_v37 = vsel %vm1002_vm0, %v1249_v29, 0.0  ;;  %v1006_v39 = vsel %vm1002_vm0, %v1001_v35, 0.0  ;;  %v927_v41 = vld [vmem:[%s758_s8] sm:$0xff]  ;;  %v819_v43 = vld [vmem:[%s4078_s9 + $0x28] sm:$0xff]  ;;  %v817_v46 = vld [vmem:[%s4078_s9 + $0x18] sm:$0xff]  ;;  %s749_s24 = scalar_lea.vmem %s4118_s19, %s2564_s27  ;;  %v1023_v52 = vperm.slane %v3159_v19, 2 }
  0x4a   : > { %954 = vmatpush.msra.mxu3 %v848_v23  ;;  %886 = vmatpush.msra.mxu1 %v825_v27  ;;  %v818_v44 = vld [vmem:[%s4078_s9 + $0x20] sm:$0xff]  ;;  %v928_v45 = vld [vmem:[%s758_s8 + $0x8] sm:$0xff]  ;;  %v816_v47 = vld [vmem:[%s4078_s9 + $0x10] sm:$0xff]  ;;  %v1009_v53 = vperm.slane %v3159_v19, 0  ;;  %v1114_v54 = vperm.slane %v3190_v31, 7  ;;  %v1030_v55 = vperm.slane %v3159_v19, 3 }
  0x4b   : > { %2571 = vmatmul.msk.f32.vlgmr.msra.gmra.mxu3 %vm932_vm1, %v927_v41  ;;  %v815_v48 = vld [vmem:[%s4078_s9 + $0x8] sm:$0xff]  ;;  %v814_v49 = vld [vmem:[%s4078_s9] sm:$0xff]  ;;  %v1016_v56 = vperm.slane %v3159_v19, 1  ;;  %v1134_v57 = vperm.slane %v3156_v18, 0  ;;  %v1051_v58 = vperm.slane %v3159_v19, 6  ;;  %v1044_v59 = vperm.slane %v3159_v19, 5 }
  0x4c   : > { %887 = vmatpush.msra.mxu1 %v824_v32  ;;  %v3241_v50 = vld [vmem:[%s749_s24] sm:$0xff]  ;;  %v1141_v60 = vperm.slane %v3156_v18, 1  ;;  %v795_v61 = vld [vmem:[%s4074_s5 + $0x78] sm:$0xff]  ;;  %v1065_v62 = vperm.slane %v3190_v31, 0  ;;  %v1058_v63 = vperm.slane %v3159_v19, 7  ;;  %v794_v0 = vld [vmem:[%s4074_s5 + $0x70] sm:$0xff] }
  0x4d   : > { %859 = vmatpush.msra.mxu0 %v795_v61  ;;  %v793_v1 = vld [vmem:[%s4074_s5 + $0x68] sm:$0xff]  ;;  %v1148_v2 = vperm.slane %v3156_v18, 2  ;;  %v792_v3 = vld [vmem:[%s4074_s5 + $0x60] sm:$0xff]  ;;  %v791_v4 = vld [vmem:[%s4074_s5 + $0x58] sm:$0xff]  ;;  %v1079_v5 = vperm.slane %v3190_v31, 2  ;;  %v1072_v6 = vperm.slane %v3190_v31, 1 }
  0x4e   : > { %888 = vmatpush.msra.mxu1 %v823_v34  ;;  %v790_v7 = vld [vmem:[%s4074_s5 + $0x50] sm:$0xff]  ;;  %v789_v8 = vld [vmem:[%s4074_s5 + $0x48] sm:$0xff]  ;;  %v1155_v9 = vperm.slane %v3156_v18, 3  ;;  %v788_v10 = vld [vmem:[%s4074_s5 + $0x40] sm:$0xff]  ;;  %v1093_v12 = vperm.slane %v3190_v31, 4  ;;  %v1086_v13 = vperm.slane %v3190_v31, 3 }
  0x4f   : > { %860 = vmatpush.msra.mxu0 %v794_v0  ;;  %v787_v11 = vld [vmem:[%s4074_s5 + $0x38] sm:$0xff]  ;;  %v786_v14 = vld [vmem:[%s4074_s5 + $0x30] sm:$0xff]  ;;  %v785_v15 = vld [vmem:[%s4074_s5 + $0x28] sm:$0xff]  ;;  %v1162_v16 = vperm.slane %v3156_v18, 4  ;;  %v1107_v21 = vperm.slane %v3190_v31, 6  ;;  %v1100_v22 = vperm.slane %v3190_v31, 5 }
  0x50   : > { %889 = vmatpush.msra.mxu1 %v822_v36  ;;  %1252 = vadd.xlane.f32.xlu2 %v1251_v37  ;;  %v784_v19 = vld [vmem:[%s4074_s5 + $0x20] sm:$0xff]  ;;  %v783_v20 = vld [vmem:[%s4074_s5 + $0x18] sm:$0xff]  ;;  %v782_v23 = vld [vmem:[%s4074_s5 + $0x10] sm:$0xff]  ;;  %v1183_v25 = vperm.slane %v3156_v18, 7  ;;  %v1169_v27 = vperm.slane %v3156_v18, 5  ;;  %v1176_v29 = vperm.slane %v3156_v18, 6 }
  0x51   : > { %1255 = vadd.xlane.f32.xlu1 %v1254_v38  ;;  %1007 = vadd.xlane.f32.xlu0 %v1006_v39  ;;  %v781_v24 = vld [vmem:[%s4074_s5 + $0x8] sm:$0xff]  ;;  %v780_v26 = vld [vmem:[%s4074_s5] sm:$0xff]  ;;  %v846_v31 = vld [vmem:[%s4080_s11 + $0x78] sm:$0xff]  ;;  %v1190_v34 = vperm.slane %v3153_v17, 0  ;;  %v1204_v36 = vperm.slane %v3153_v17, 2  ;;  %v1211_v37 = vperm.slane %v3153_v17, 3 }
  0x52   : > { %890 = vmatpush.msra.mxu1 %v821_v40  ;;  %861 = vmatpush.msra.mxu0 %v793_v1  ;;  %v845_v32 = vld [vmem:[%s4080_s11 + $0x70] sm:$0xff]  ;;  %v844_v33 = vld [vmem:[%s4080_s11 + $0x68] sm:$0xff]  ;;  %v843_v18 = vld [vmem:[%s4080_s11 + $0x60] sm:$0xff]  ;;  %s4119_s18 = sld [smem:[#allocation15_spill]]  ;;  %s2941_s25 = smov 96   ;;  %vm2310_vm5 = vcmask 1042434  }
  0x53   : > { %2572 = vmatmul.msk.f32.gmra.mxu3 %vm932_vm1, %v928_v45  ;;  %906 = vmatpush.msra.mxu2 %v846_v31  ;;  %v856_v35 = vld [vmem:[%s4084_s15 + $0x18] sm:$0xff]  ;;  %v841_v39 = vld [vmem:[%s4080_s11 + $0x50] sm:$0xff]  ;;  %v840_v41 = vld [vmem:[%s4080_s11 + $0x48] sm:$0xff]  ;;  %v1225_v45 = vperm.slane %v3153_v17, 5  ;;  %v1280_v31 = vperm.slane %v3182_v28, 3  ;;  %s4121_s23 = sld [smem:[#allocation20_spill]] }
  0x54   : > { %891 = vmatpush.msra.mxu1 %v820_v42  ;;  %862 = vmatpush.msra.mxu0 %v792_v3  ;;  %v842_v38 = vld [vmem:[%s4080_s11 + $0x58] sm:$0xff]  ;;  %v855_v40 = vld [vmem:[%s4084_s15 + $0x10] sm:$0xff]  ;;  %v1197_v42 = vperm.slane %v3153_v17, 1  ;;  %v2676_v3 = vld [vmem:[%s4073_s4 + $0x8] sm:$0xff]  ;;  %vm2313_vm6 = vcmask 1043459   ;;  %vm2316_vm7 = vcmask 1044484  }
  0x55   : > { %907 = vmatpush.msra.mxu2 %v845_v32  ;;  %985 = vmatpush.msrb.mxu3 %v856_v35  ;;  %v2834_v32 = vld [vmem:[%s4079_s10] ss:$0 sm:$0xff]  ;;  %vm2319_vm10 = vcmask 1045509   ;;  %vm2322_vm12 = vcmask 1046534   ;;  %vm2325_vm13 = vcmask 1047559   ;;  %s2671_s8 = sshll.u32 %s2925_s0, 2 }
  0x56   : > { %892 = vmatpush.msra.mxu1 %v819_v43  ;;  %863 = vmatpush.msra.mxu0 %v791_v4  ;;  %v839_v43 = vld [vmem:[%s4080_s11 + $0x40] sm:$0xff]  ;;  %v3399_v4 = vld [vmem:[%s3150_s26 + $0x38] sm:$0xff]  ;;  %s2560_s24 = sshll.u32 %s3134_s21, 4  ;;  %s2374_s16 = sadd.s32 %s2671_s8, %s3179_s17 }
  0x57   : > { %908 = vmatpush.msra.mxu2 %v844_v33  ;;  %986 = vmatpush.msrb.mxu3 %v855_v40  ;;  %s2672_s0 = sshll.u32 %s2374_s16, 3 }
  0x58   : > { %893 = vmatpush.msra.mxu1 %v818_v44  ;;  %864 = vmatpush.msra.mxu0 %v790_v7  ;;  %v854_v44 = vld [vmem:[%s4084_s15 + $0x8] sm:$0xff]  ;;  %v2675_v7 = vld [vmem:[%s4073_s4] sm:$0xff] }
  0x59   : > { %909 = vmatpush.msra.mxu2 %v843_v18  ;;  %987 = vmatpush.msrb.mxu3 %v854_v44  ;;  %v1475_v44 = vperm.slane %v3399_v4, 5 }
  0x5a   : > { %894 = vmatpush.msra.mxu1 %v817_v46  ;;  %865 = vmatpush.msra.mxu0 %v789_v8  ;;  %v1232_v46 = vperm.slane %v3153_v17, 6 }
  0x5b   : > { %910 = vmatpush.msra.mxu2 %v842_v38 }
  0x5c   : > { %895 = vmatpush.msra.mxu1 %v816_v47  ;;  %866 = vmatpush.msra.mxu0 %v788_v10  ;;  %v838_v47 = vld [vmem:[%s4080_s11 + $0x38] sm:$0xff]  ;;  %v1447_v10 = vperm.slane %v3399_v4, 1 }
  0x5d   : > { %911 = vmatpush.msra.mxu2 %v841_v39 }
  0x5e   : > { %896 = vmatpush.msra.mxu1 %v815_v48  ;;  %867 = vmatpush.msra.mxu0 %v787_v11  ;;  %v1218_v48 = vperm.slane %v3153_v17, 4 }
  0x5f   : > { %912 = vmatpush.msra.mxu2 %v840_v41 }
  0x60   : > { %897 = vmatpush.msra.mxu1 %v814_v49  ;;  %868 = vmatpush.msra.mxu0 %v786_v14  ;;  %v1294_v49 = vperm.slane %v3182_v28, 5  ;;  %v1329_v14 = vperm.slane %v3187_v30, 2 }
  0x61   : > { %898 = vmatmul.f32.vlgmr.msra.gmra.mxu1 %v3241_v50  ;;  %913 = vmatpush.msra.mxu2 %v839_v43 }
  0x62   : > { %869 = vmatpush.msra.mxu0 %v785_v15 }
  0x63   : > { %914 = vmatpush.msra.mxu2 %v838_v47 }
  0x64   : > { %870 = vmatpush.msra.mxu0 %v784_v19 }
  0x65   : > { %1042 = vperm.xlu0 %2830, %v1037_v51   ;;  %v1301_v51 = vperm.slane %v3182_v28, 6 }
  0x66   : > { %871 = vmatpush.msra.mxu0 %v783_v20 }
  0x68   : > { %1028 = vperm.xlu2 %2831, %v1023_v52   ;;  %872 = vmatpush.msra.mxu0 %v782_v23  ;;  %v853_v52 = vld [vmem:[%s4084_s15] sm:$0xff] }
  0x69   : > { %988 = vmatpush.msrb.mxu3 %v853_v52 }
  0x6a   : > { %1014 = vperm.xlu1 %2832, %v1009_v53   ;;  %873 = vmatpush.msra.mxu0 %v781_v24  ;;  %v836_v53 = vld [vmem:[%s4080_s11 + $0x28] sm:$0xff]  ;;  %v1461_v24 = vperm.slane %v3399_v4, 3 }
  0x6c   : > { %874 = vmatpush.msra.mxu0 %v780_v26  ;;  %v1343_v26 = vperm.slane %v3187_v30, 4 }
  0x6d   : > { %1119 = vperm.xlu0 %2830, %v1114_v54   ;;  %875 = vmatmul.f32.vlgmr.msra.gmra.mxu0 %v3241_v50  ;;  %v837_v50 = vld [vmem:[%s4080_s11 + $0x30] sm:$0xff]  ;;  %v2678_v54 = vld [vmem:[%s4073_s4 + $0x18] sm:$0xff] }
  0x6e   : > { %915 = vmatpush.msra.mxu2 %v837_v50  ;;  %2742 = vmatpush.bf16.msra.mxu3 %v2678_v54 }
  0x70   : > { %1035 = vperm.xlu2 %2831, %v1030_v55   ;;  %v3375_v55 = vld [vmem:[%s3150_s26 + $0x30] sm:$0xff]  ;;  %916 = vmatpush.msra.mxu2 %v836_v53  ;;  %s2561_s26 = sshll.u32 %s2921_s30, 4  ;;  %s2562_s30 = sshll.u32 %s3170_s2, 5 }
  0x71   : > { %v1384_v61 = vperm.slane %v3375_v55, 0  ;;  %v1391_v1 = vperm.slane %v3375_v55, 1  ;;  %v1398_v19 = vperm.slane %v3375_v55, 2  ;;  %v1405_v20 = vperm.slane %v3375_v55, 3  ;;  %p739_p3 = scmp.lt.s32.totalorder %s2561_s26, 31 }
  0x72   : > { %1021 = vperm.xlu1 %2832, %v1016_v56   ;;  %v835_v56 = vld [vmem:[%s4080_s11 + $0x20] sm:$0xff]  ;;  %v1412_v18 = vperm.slane %v3375_v55, 4  ;;  %v1426_v53 = vperm.slane %v3375_v55, 6 }
  0x73   : > { %917 = vmatpush.msra.mxu2 %v835_v56  ;;  %s4144_s26 = smov (!%p739_p3, %s2561_s26), 31 }
  0x74   : > { %s3432_s19 = sadd.s32 %s2562_s30, %s4144_s26 }
  0x75   : > { %1139 = vperm.xlu0 %2830, %v1134_v57   ;;  %v1239_v57 = vperm.slane %v3153_v17, 7  ;;  %v833_v17 = vld [vmem:[%s4080_s11 + $0x10] sm:$0xff]  ;;  %s2563_s2 = sshll.u32 %s3432_s19, 2  ;;  %s2939_s19 = smov 32  }
  0x76   : > { %s3445_s27 = scalar_lea.vmem %s4119_s18, %s2563_s2  ;;  %s4120_s18 = sld [smem:[#allocation17_spill]] }
  0x77   : > { %v2687_v47 = vld [vmem:[%s3445_s27] sm:$0xff]  ;;  %s3754_s26 = scalar_lea.vmem %s4121_s23, %s2563_s2  ;;  %s2940_s2 = smov 64  }
  0x78   : > { %1056 = vperm.xlu2 %2831, %v1051_v58   ;;  %v834_v58 = vld [vmem:[%s4080_s11 + $0x18] sm:$0xff]  ;;  %s2376_s23 = scalar_lea.hbm %s4125_s22, %s2672_s0 }
  0x79   : > { %918 = vmatpush.msra.mxu2 %v834_v58 }
  0x7a   : > { %1049 = vperm.xlu1 %2832, %v1044_v59  }
  0x7b   : > { %919 = vmatpush.msra.mxu2 %v833_v17  ;;  %v1322_v17 = vperm.slane %v3187_v30, 1 }
  0x7d   : > { %1146 = vperm.xlu0 %2830, %v1141_v60  }
  0x80   : > { %1070 = vperm.xlu2 %2831, %v1065_v62  }
  0x82   : > { %1063 = vperm.xlu1 %2832, %v1058_v63   ;;  %v2677_v63 = vld [vmem:[%s4073_s4 + $0x10] sm:$0xff] }
  0x83   : > { %2743 = vmatpush.bf16.msra.mxu3 %v2677_v63 }
  0x85   : > { %1153 = vperm.xlu0 %2830, %v1148_v2   ;;  %v832_v2 = vld [vmem:[%s4080_s11 + $0x8] sm:$0xff] }
  0x86   : > { %920 = vmatpush.msra.mxu2 %v832_v2 }
  0x87   : > { %2744 = vmatpush.bf16.msra.mxu3 %v2676_v3 }
  0x88   : > { %1084 = vperm.xlu2 %2831, %v1079_v5   ;;  %v831_v5 = vld [vmem:[%s4080_s11] sm:$0xff] }
  0x89   : > { %921 = vmatpush.msra.mxu2 %v831_v5 }
  0x8a   : > { %1077 = vperm.xlu1 %2832, %v1072_v6   ;;  %v1259_v6 = vperm.slane %v3182_v28, 0 }
  0x8b   : > { %1654 = vmatpush.bf16.msrb.mxu2 %v2678_v54  ;;  %2745 = vmatpush.bf16.msra.mxu3 %v2675_v7  ;;  %v1433_v54 = vperm.slane %v3375_v55, 7 }
  0x8d   : > { %1160 = vperm.xlu0 %2830, %v1155_v9  }
  0x8f   : > { %1655 = vmatpush.bf16.msrb.mxu2 %v2677_v63 }
  0x90   : > { %1098 = vperm.xlu2 %2831, %v1093_v12  }
  0x92   : > { %1091 = vperm.xlu1 %2832, %v1086_v13  }
  0x93   : > { %1656 = vmatpush.bf16.msrb.mxu2 %v2676_v3 }
  0x95   : > { %1167 = vperm.xlu0 %2830, %v1162_v16   ;;  %v1266_v16 = vperm.slane %v3182_v28, 1 }
  0x97   : > { %1657 = vmatpush.bf16.msrb.mxu2 %v2675_v7 }
  0x98   : > { %1112 = vperm.xlu2 %2831, %v1107_v21   ;;  %v2833_v21 = vld [vmem:[%s4083_s14] ss:$0 sm:$0xff] }
  0x9a   : > { %1105 = vperm.xlu1 %2832, %v1100_v22   ;;  %v1273_v22 = vperm.slane %v3182_v28, 2 }
  0x9d   : > { %1188 = vperm.xlu0 %2830, %v1183_v25  }
  0xa0   : > { %1174 = vperm.xlu2 %2831, %v1169_v27  }
  0xa2   : > { %1181 = vperm.xlu1 %2832, %v1176_v29  }
  0xa5   : > { %1195 = vperm.xlu0 %2830, %v1190_v34  }
  0xa8   : > { %1209 = vperm.xlu2 %2831, %v1204_v36  }
  0xaa   : > { %1216 = vperm.xlu1 %2832, %v1211_v37   ;;  %v1419_v37 = vperm.slane %v3375_v55, 5 }
  0xad   : > { %1202 = vperm.xlu0 %2830, %v1197_v42   ;;  %v1287_v42 = vperm.slane %v3182_v28, 4 }
  0xb0   : > { %1230 = vperm.xlu2 %2831, %v1225_v45   ;;  %v2690_v45 = vld [vmem:[%s3445_s27 + $0x18] sm:$0xff] }
  0xb2   : > { %1237 = vperm.xlu1 %2832, %v1232_v46   ;;  %v1357_v46 = vperm.slane %v3187_v30, 6 }
  0xb5   : > { %1223 = vperm.xlu0 %2830, %v1218_v48  }
  0xb8   : > { %1299 = vperm.xlu2 %2831, %v1294_v49  }
  0xba   : > { %1306 = vperm.xlu1 %2832, %v1301_v51   ;;  %v1308_v51 = vperm.slane %v3182_v28, 7 }
  0xbb   : > { %v1131_v59 = vpop.xlane.xlu2 %1130 }
  0xbc   : > { %v1128_v60 = vpop.xlane.xlu1 %1127  ;;  %v1005_v62 = vpop.xlane.xlu0 %1004 }
  0xbd   : > { %v1132_v0 = vadd.f32 %v1128_v60, %v1005_v62  ;;  %1244 = vperm.xlu0 %2830, %v1239_v57   ;;  %v1489_v60 = vperm.slane %v3399_v4, 7  ;;  %v2688_v62 = vld [vmem:[%s3445_s27 + $0x8] sm:$0xff] }
  0xc0   : > { %1389 = vperm.xlu2 %2831, %v1384_v61   ;;  %v2691_v61 = vld [vmem:[%s3445_s27 + $0x20] sm:$0xff] }
  0xc2   : > { %1396 = vperm.xlu1 %2832, %v1391_v1  }
  0xc3   : > { %v1253_v8 = vpop.xlane.xlu2 %1252 }
  0xc4   : > { %v3408_v9 = vadd.f32 %v1253_v8, %v1132_v0  ;;  %v1008_v11 = vpop.xlane.xlu0 %1007  ;;  %v1256_v12 = vpop.xlane.xlu1 %1255  ;;  %v2692_v8 = vld [vmem:[%s3445_s27 + $0x28] sm:$0xff] }
  0xc5   : > { %1264 = vperm.xlu0 %2830, %v1259_v6   ;;  %v1133_v13 = vadd.f32 %v1131_v59, %v1008_v11  ;;  %v1315_v59 = vperm.slane %v3187_v30, 0  ;;  %v1440_v6 = vperm.slane %v3399_v4, 0  ;;  %v2689_v11 = vld [vmem:[%s3445_s27 + $0x10] sm:$0xff] }
  0xc7   : > { %v3412_v15 = vadd.f32 %v1256_v12, %v1133_v13 }
  0xc8   : > { %1452 = vperm.xlu2 %2831, %v1447_v10  }
  0xca   : > { %1334 = vperm.xlu1 %2832, %v1329_v14   ;;  %v1336_v14 = vperm.slane %v3187_v30, 3 }
  0xcb   : > { %v1029_v48 = vpop.permute.xlu2 %1028 }
  0xcd   : > { %1271 = vperm.xlu0 %2830, %v1266_v16  }
  0xce   : > { %v956_v23 = vpop.f32.mrf.mxu3 }
  0xcf   : > { %v957_v25 = vadd.f32 %v2833_v21, %v956_v23 }
  0xd0   : > { %1403 = vperm.xlu2 %2831, %v1398_v19  }
  0xd1   : > { %v962_v27 = vmax.f32 %v957_v25, 0.0 }
  0xd2   : > { %1410 = vperm.xlu1 %2832, %v1405_v20  }
  0xd3   : > { %2573 = vmatmul.msk.f32.vlgmr.msrb.gmra.mxu3 %vm932_vm1, %v962_v27  ;;  %v1036_v58 = vpop.permute.xlu2 %1035 }
  0xd5   : > { %1278 = vperm.xlu0 %2830, %v1273_v22   ;;  %v1454_v22 = vperm.slane %v3399_v4, 2 }
  0xd6   : > { %v959_v33 = vpop.f32.mrf.mxu3 }
  0xd7   : > { %v3424_v29 = vpop.permute.xlu0 %1042  ;;  %v960_v35 = vadd.f32 %v2833_v21, %v959_v33  ;;  %v1350_v33 = vperm.slane %v3187_v30, 5 }
  0xd8   : > { %1466 = vperm.xlu2 %2831, %v1461_v24   ;;  %v2693_v24 = vld [vmem:[%s3445_s27 + $0x30] sm:$0xff] }
  0xd9   : > { %v963_v38 = vmax.f32 %v960_v35, 0.0  ;;  %v1468_v35 = vperm.slane %v3399_v4, 4 }
  0xda   : > { %1348 = vperm.xlu1 %2832, %v1343_v26   ;;  %v1374_v26 = vand.u32 2147483647, %v3375_v55 }
  0xdb   : > { %2574 = vmatmul.msk.f32.gmra.mxu3 %vm932_vm1, %v963_v38  ;;  %v1057_v1 = vpop.permute.xlu2 %1056  ;;  %v2694_v38 = vld [vmem:[%s3445_s27 + $0x38] sm:$0xff] }
  0xdc   : > { %v1015_v34 = vpop.permute.xlu1 %1014 }
  0xdd   : > { %1285 = vperm.xlu0 %2830, %v1280_v31   ;;  %v1376_v31 = vsel %vm1002_vm0, %v1374_v26, 0.0 }
  0xde   : > { %v899_v36 = vpop.f32.mrf.mxu1 }
  0xdf   : > { %v900_v39 = vadd.f32 %v2834_v32, %v899_v36  ;;  %v3437_v40 = vpop.permute.xlu0 %1119 }
  0xe0   : > { %1417 = vperm.xlu2 %2831, %v1412_v18  }
  0xe1   : > { %v902_v41 = vmax.f32 %v900_v39, 0.0 }
  0xe2   : > { %1424 = vperm.xlu1 %2832, %v1419_v37  }
  0xe3   : > { %922 = vmatmul.f32.vlgmr.msra.gmra.mxu2 %v902_v41  ;;  %2632 = vmatmul.msk.bf16.vlgmr.msra.gmra.mxu3 %vm1512_vm2, %v2690_v45  ;;  %v1071_v10 = vpop.permute.xlu2 %1070  ;;  %v1482_v45 = vperm.slane %v3399_v4, 6 }
  0xe4   : > { %v1022_v43 = vpop.permute.xlu1 %1021 }
  0xe5   : > { %1292 = vperm.xlu0 %2830, %v1287_v42  }
  0xe7   : > { %v1140_v49 = vpop.permute.xlu0 %1139 }
  0xe8   : > { %1480 = vperm.xlu2 %2831, %v1475_v44   ;;  %v3454_v50 = vsel %vm932_vm1, %v1015_v34, %v1140_v49 }
  0xea   : > { %1362 = vperm.xlu1 %2832, %v1357_v46   ;;  %v3579_v26 = vpop.f32.mrf.mxu0 }
  0xeb   : > { %2629 = vmatmul.msk.bf16.vlgmr.msrb.gmra.mxu2 %vm1512_vm2, %v2687_v47  ;;  %v3492_v19 = vpop.permute.xlu2 %1084 }
  0xec   : > { %v3458_v52 = vpop.permute.xlu1 %1049 }
  0xed   : > { %1313 = vperm.xlu0 %2830, %v1308_v51   ;;  %v2686_v51 = vld [vmem:[%s4076_s7 + $0x38] sm:$0xff] }
  0xee   : > { %1825 = vmatpush.bf16.msrb.mxu0 %v2686_v51  ;;  %2746 = vmatpush.bf16.msrb.mxu1 %v2686_v51 }
  0xef   : > { %v1147_v56 = vpop.permute.xlu0 %1146 }
  0xf0   : > { %1431 = vperm.xlu2 %2831, %v1426_v53   ;;  %v3463_v57 = vsel %vm932_vm1, %v1022_v43, %v1147_v56  ;;  %v1364_v43 = vperm.slane %v3187_v30, 7  ;;  %v2685_v30 = vld [vmem:[%s4076_s7 + $0x30] sm:$0xff]  ;;  %v2684_v56 = vld [vmem:[%s4076_s7 + $0x28] sm:$0xff] }
  0xf2   : > { %1438 = vperm.xlu1 %2832, %v1433_v54   ;;  %1826 = vmatpush.bf16.msrb.mxu0 %v2685_v30 }
  0xf3   : > { %2633 = vmatmul.msk.bf16.gmra.mxu3 %vm1512_vm2, %v2691_v61  ;;  %v1099_v32 = vpop.permute.xlu2 %1098  ;;  %2747 = vmatpush.bf16.msrb.mxu1 %v2685_v30  ;;  %v2682_v61 = vld [vmem:[%s4076_s7 + $0x18] sm:$0xff] }
  0xf4   : > { %v1064_v28 = vpop.permute.xlu1 %1063 }
  0xf5   : > { %1320 = vperm.xlu0 %2830, %v1315_v59   ;;  %v2683_v59 = vld [vmem:[%s4076_s7 + $0x20] sm:$0xff] }
  0xf6   : > { %1827 = vmatpush.bf16.msrb.mxu0 %v2684_v56 }
  0xf7   : > { %v1154_v63 = vpop.permute.xlu0 %1153  ;;  %2748 = vmatpush.bf16.msrb.mxu1 %v2684_v56 }
  0xf8   : > { %1494 = vperm.xlu2 %2831, %v1489_v60   ;;  %v3471_v0 = vsel %vm932_vm1, %v1029_v48, %v1154_v63  ;;  %v1375_v63 = vand.u32 2147483647, %v3399_v4  ;;  %v2679_v4 = vld [vmem:[%s4076_s7] sm:$0xff] }
  0xfa   : > { %1828 = vmatpush.bf16.msrb.mxu0 %v2683_v59 }
  0xfb   : > { %2630 = vmatmul.msk.bf16.gmra.mxu2 %vm1512_vm2, %v2688_v62  ;;  %v1113_v36 = vpop.permute.xlu2 %1112  ;;  %2749 = vmatpush.bf16.msrb.mxu1 %v2683_v59 }
  0xfc   : > { %v1078_v2 = vpop.permute.xlu1 %1077 }
  0xfd   : > { %1327 = vperm.xlu0 %2830, %v1322_v17   ;;  %v2681_v17 = vld [vmem:[%s4076_s7 + $0x10] sm:$0xff] }
  0xfe   : > { %1829 = vmatpush.bf16.msrb.mxu0 %v2682_v61 }
  0xff   : > { %v1161_v3 = vpop.permute.xlu0 %1160  ;;  %2750 = vmatpush.bf16.msrb.mxu1 %v2682_v61 }
 0x100   : > { %v3476_v5 = vsel %vm932_vm1, %v1036_v58, %v1161_v3  ;;  %v1379_v3 = vsel %vm1002_vm0, %v1375_v63, 0.0 }
 0x102   : > { %1830 = vmatpush.bf16.msrb.mxu0 %v2681_v17 }
 0x103   : > { %2634 = vmatmul.msk.bf16.gmra.mxu3 %vm1512_vm2, %v2692_v8  ;;  %v3527_v46 = vpop.permute.xlu2 %1174  ;;  %2751 = vmatpush.bf16.msrb.mxu1 %v2681_v17 }
 0x104   : > { %v3479_v7 = vpop.permute.xlu1 %1091 }
 0x105   : > { %1445 = vperm.xlu0 %2830, %v1440_v6   ;;  %v2680_v6 = vld [vmem:[%s4076_s7 + $0x8] sm:$0xff] }
 0x106   : > { %1831 = vmatpush.bf16.msrb.mxu0 %v2680_v6 }
 0x107   : > { %v1168_v12 = vpop.permute.xlu0 %1167  ;;  %2752 = vmatpush.bf16.msrb.mxu1 %v2680_v6 }
 0x108   : > { %v3486_v13 = vsel %vm932_vm1, %v3424_v29, %v1168_v12 }
 0x10a   : > { %1832 = vmatpush.bf16.msrb.mxu0 %v2679_v4 }
 0x10b   : > { %2631 = vmatmul.msk.bf16.gmra.mxu2 %vm1512_vm2, %v2689_v11  ;;  %v3529_v49 = vpop.permute.xlu2 %1209  ;;  %2753 = vmatpush.bf16.msrb.mxu1 %v2679_v4 }
 0x10c   : > { %v3490_v16 = vpop.permute.xlu1 %1105 }
 0x10d   : > { %1341 = vperm.xlu0 %2830, %v1336_v14  }
 0x10f   : > { %v1189_v20 = vpop.permute.xlu0 %1188 }
 0x110   : > { %v3495_v21 = vsel %vm932_vm1, %v1064_v28, %v1189_v20 }
 0x113   : > { %2635 = vmatmul.msk.bf16.gmra.mxu3 %vm1512_vm2, %v2693_v24  ;;  %v3537_v54 = vpop.permute.xlu2 %1230 }
 0x114   : > { %v1182_v23 = vpop.permute.xlu1 %1181 }
 0x115   : > { %v3500_v25 = vsel %vm932_vm1, %v1057_v1, %v1182_v23  ;;  %1459 = vperm.xlu0 %2830, %v1454_v22  }
 0x117   : > { %v1196_v27 = vpop.permute.xlu0 %1195 }
 0x118   : > { %v3505_v29 = vsel %vm932_vm1, %v1071_v10, %v1196_v27 }
 0x11b   : > { %v3549_v60 = vpop.permute.xlu2 %1299 }
 0x11c   : > { %1377 = vadd.xlane.f32.xlu1 %v1376_v31  ;;  %v3509_v34 = vpop.permute.xlu1 %1216 }
 0x11d   : > { %1355 = vperm.xlu0 %2830, %v1350_v33  }
 0x11f   : > { %v1203_v18 = vpop.permute.xlu0 %1202 }
 0x120   : > { %v3512_v55 = vsel %vm932_vm1, %v1078_v2, %v1203_v18 }
 0x123   : > { %2636 = vmatmul.msk.bf16.gmra.mxu3 %vm1512_vm2, %v2694_v38  ;;  %v1390_v8 = vpop.permute.xlu2 %1389 }
 0x124   : > { %v1238_v37 = vpop.permute.xlu1 %1237 }
 0x125   : > { %v3517_v39 = vsel %vm932_vm1, %v1113_v36, %v1238_v37  ;;  %1473 = vperm.xlu0 %2830, %v1468_v35  }
 0x127   : > { %v1224_v41 = vpop.permute.xlu0 %1223 }
 0x128   : > { %v3521_v42 = vsel %vm932_vm1, %v1099_v32, %v1224_v41  ;;  %v3596_v41 = vld [vmem:[%s4075_s6] ss:$0 sm:$0xff] }
 0x12b   : > { %v1453_v22 = vpop.permute.xlu2 %1452 }
 0x12c   : > { %v3547_v28 = vpop.permute.xlu1 %1306 }
 0x12d   : > { %1369 = vperm.xlu0 %2830, %v1364_v43  }
 0x12f   : > { %v3524_v44 = vpop.permute.xlu0 %1244 }
 0x134   : > { %v1397_v2 = vpop.permute.xlu1 %1396 }
 0x135   : > { %1487 = vperm.xlu0 %2830, %v1482_v45  }
 0x137   : > { %v1265_v47 = vpop.permute.xlu0 %1264 }
 0x138   : > { %v1513_v23 = vsel %vm1512_vm2, %v3454_v50, %v1265_v47  ;;  %v1404_v50 = vpop.permute.xlu2 %1403 }
 0x139   : > { %v3582_v27 = vsel %vm1529_vm3, %v1513_v23, %v1390_v8 }
 0x13a   : > { %v1699_v35 = vmul.f32 %v3582_v27, %v3579_v26 }
 0x13c   : > { %v1335_v14 = vpop.permute.xlu1 %1334 }
 0x13f   : > { %v1272_v48 = vpop.permute.xlu0 %1271 }
 0x140   : > { %v1514_v32 = vsel %vm1512_vm2, %v3463_v57, %v1272_v48 }
 0x141   : > { %v3589_v36 = vsel %vm1529_vm3, %v1514_v32, %v1397_v2 }
 0x142   : > { %v1700_v57 = vmul.f32 %v3589_v36, %v3579_v26 }
 0x144   : > { %v1411_v18 = vpop.permute.xlu1 %1410 }
 0x147   : > { %v1279_v53 = vpop.permute.xlu0 %1278 }
 0x148   : > { %v1515_v59 = vsel %vm1512_vm2, %v3471_v0, %v1279_v53 }
 0x149   : > { %v3616_v4 = vsel %vm1529_vm3, %v1515_v59, %v1404_v50 }
 0x14c   : > { %v3609_v61 = vpop.permute.xlu1 %1348 }
 0x14f   : > { %v3542_v58 = vpop.permute.xlu0 %1285 }
 0x150   : > { %v1516_v0 = vsel %vm1512_vm2, %v3476_v5, %v3542_v58 }
 0x151   : > { %v3627_v32 = vsel %vm1529_vm3, %v1516_v0, %v1411_v18 }
 0x152   : > { %v1702_v5 = vmul.f32 %v3627_v32, %v3579_v26 }
 0x156   : > { %v3560_v1 = vpop.f32.mrf.mxu3 }
 0x157   : > { %v3554_v62 = vpop.permute.xlu0 %1292 }
 0x15e   : > { %v3571_v11 = vpop.f32.mrf.mxu3 }
 0x15f   : > { %1380 = vadd.xlane.f32.xlu0 %v1379_v3  ;;  %v3569_v10 = vpop.permute.xlu0 %1313  ;;  %v1467_v3 = vpop.permute.xlu2 %1466 }
 0x166   : > { %v3573_v12 = vpop.f32.mrf.mxu2  ;;  %v3577_v24 = vpop.f32.mrf.mxu3 }
 0x167   : > { %v1321_v20 = vpop.permute.xlu0 %1320 }
 0x168   : > { %v1521_v51 = vsel %vm1512_vm2, %v3505_v29, %v1321_v20 }
 0x16e   : > { %v1659_v31 = vpop.f32.mrf.mxu2  ;;  %v3591_v38 = vpop.f32.mrf.mxu3 }
 0x16f   : > { %v1328_v33 = vpop.permute.xlu0 %1327  ;;  %v1715_v37 = vadd.f32 %v1699_v35, %v1659_v31 }
 0x170   : > { %v1522_v6 = vsel %vm1512_vm2, %v3512_v55, %v1328_v33  ;;  %v1701_v55 = vmul.f32 %v3616_v4, %v3579_v26 }
 0x171   : > { %v1734_v45 = vadd.f32 %v3596_v41, %v1715_v37  ;;  %v3622_v53 = vsel %vm1529_vm3, %v1522_v6, %v1453_v22  ;;  %v1425_v37 = vpop.permute.xlu1 %1424  ;;  %v1517_v6 = vsel %vm1512_vm2, %v3486_v13, %v3554_v62 }
 0x172   : > { %v1708_v33 = vmul.f32 %v3622_v53, %v3579_v26 }
 0x173   : > { %v1750_v63 = vmax.f32 %v1734_v45, 0.0 }
 0x176   : > { %v1661_v43 = vpop.f32.mrf.mxu2  ;;  %v1679_v2 = vpop.f32.mrf.mxu3 }
 0x177   : > { %v1716_v47 = vadd.f32 %v1700_v57, %v1661_v43  ;;  %v1446_v48 = vpop.permute.xlu0 %1445  ;;  %v1418_v43 = vpop.permute.xlu2 %1417 }
 0x178   : > { %v3605_v56 = vsel %vm1529_vm3, %v1521_v51, %v1446_v48  ;;  %v1506_v48 = vsel %vm932_vm1, %v3492_v19, %v3529_v49  ;;  %v1507_v19 = vsel %vm932_vm1, %v3479_v7, %v3509_v34  ;;  %v3657_v13 = vsel %vm1529_vm3, %v1517_v6, %v1418_v43 }
 0x179   : > { %v1735_v30 = vadd.f32 %v3596_v41, %v1716_v47  ;;  %v1707_v29 = vmul.f32 %v3605_v56, %v3579_v26 }
 0x17b   : > { %v1751_v17 = vmax.f32 %v1735_v30, 0.0  ;;  %v1723_v31 = vadd.f32 %v1707_v29, %v1679_v2  ;;  %v1523_v30 = vsel %vm1512_vm2, %v1506_v48, %v1335_v14 }
 0x17d   : > { %v1766_v8 = vpack.c.bf16 %v1751_v17, %v1750_v63  ;;  %v1742_v58 = vadd.f32 %v3596_v41, %v1723_v31 }
 0x17e   : > { %v1664_v20 = vpop.f32.mrf.mxu2  ;;  %v1681_v50 = vpop.f32.mrf.mxu3 }
 0x17f   : > { %1833 = vmatmul.bf16.vlgmr.msrb.gmra.mxu0 %v1766_v8  ;;  %v1342_v23 = vpop.permute.xlu0 %1341  ;;  %v1717_v35 = vadd.f32 %v1701_v55, %v1664_v20  ;;  %v1724_v57 = vadd.f32 %v1708_v33, %v1681_v50  ;;  %v1758_v17 = vmax.f32 %v1742_v58, 0.0  ;;  %v1501_v55 = vsel %vm932_vm1, %v3458_v52, %v3527_v46  ;;  %v1363_v33 = vpop.permute.xlu1 %1362 }
 0x180   : > { %v1524_v14 = vsel %vm1512_vm2, %v1507_v19, %v1342_v23  ;;  %v1518_v23 = vsel %vm1512_vm2, %v1501_v55, %v3549_v60 }
 0x181   : > { %v1743_v45 = vadd.f32 %v3596_v41, %v1724_v57  ;;  %v1736_v47 = vadd.f32 %v3596_v41, %v1717_v35  ;;  %v3660_v7 = vsel %vm1529_vm3, %v1524_v14, %v1467_v3  ;;  %v1481_v35 = vpop.permute.xlu2 %1480  ;;  %v1703_v57 = vmul.f32 %v3657_v13, %v3579_v26 }
 0x182   : > { %v3667_v52 = vsel %vm1529_vm3, %v1518_v23, %v1425_v37  ;;  %v1710_v46 = vmul.f32 %v3660_v7, %v3579_v26  ;;  %v1525_v37 = vsel %vm1512_vm2, %v3521_v42, %v3609_v61  ;;  %v1509_v42 = vsel %vm932_vm1, %v3490_v16, %v3537_v54 }
 0x183   : > { %v1759_v59 = vmax.f32 %v1743_v45, 0.0  ;;  %v1752_v29 = vmax.f32 %v1736_v47, 0.0  ;;  %v1704_v3 = vmul.f32 %v3667_v52, %v3579_v26  ;;  %v1519_v14 = vsel %vm1512_vm2, %v3500_v25, %v3547_v28 }
 0x185   : > { %v1770_v20 = vpack.c.bf16 %v1759_v59, %v1758_v17 }
 0x186   : > { %v1666_v22 = vpop.f32.mrf.mxu2  ;;  %v1684_v49 = vpop.f32.mrf.mxu3 }
 0x187   : > { %v1718_v18 = vadd.f32 %v1702_v5, %v1666_v22  ;;  %v1460_v51 = vpop.permute.xlu0 %1459  ;;  %1853 = vmatmul.bf16.vlgmr.msrb.gmra.mxu1 %v1770_v20 }
 0x188   : > { %v3642_v2 = vsel %vm1529_vm3, %v1523_v30, %v1460_v51  ;;  %v1439_v51 = vpop.permute.xlu1 %1438 }
 0x189   : > { %v1737_v63 = vadd.f32 %v3596_v41, %v1718_v18  ;;  %v1709_v0 = vmul.f32 %v3642_v2, %v3579_v26  ;;  %v1432_v6 = vpop.permute.xlu2 %1431 }
 0x18b   : > { %v1753_v8 = vmax.f32 %v1737_v63, 0.0  ;;  %v1725_v50 = vadd.f32 %v1709_v0, %v1684_v49 }
 0x18d   : > { %v1767_v31 = vpack.c.bf16 %v1753_v8, %v1752_v29  ;;  %v1744_v43 = vadd.f32 %v3596_v41, %v1725_v50  ;;  %v1520_v29 = vsel %vm1512_vm2, %v3495_v21, %v3569_v10 }
 0x18e   : > { %v1669_v62 = vpop.f32.mrf.mxu2  ;;  %v1686_v58 = vpop.f32.mrf.mxu3  ;;  %v3690_v61 = vsel %vm1529_vm3, %v1520_v29, %v1439_v51 }
 0x18f   : > { %1838 = vmatmul.bf16.gmra.mxu0 %v1767_v31  ;;  %v1356_v34 = vpop.permute.xlu0 %1355  ;;  %v1719_v5 = vadd.f32 %v1703_v57, %v1669_v62  ;;  %v1726_v22 = vadd.f32 %v1710_v46, %v1686_v58  ;;  %v1760_v63 = vmax.f32 %v1744_v43, 0.0  ;;  %v3699_v31 = vsel %vm1529_vm3, %v1519_v14, %v1432_v6 }
 0x190   : > { %v1526_v0 = vsel %vm1512_vm2, %v1509_v42, %v1356_v34  ;;  %v1706_v16 = vmul.f32 %v3690_v61, %v3579_v26  ;;  %v1705_v25 = vmul.f32 %v3699_v31, %v3579_v26  ;;  %v2837_v42 = vld [vmem:[%s4081_s12] ss:$0 sm:$0xff] }
 0x191   : > { %v1745_v45 = vadd.f32 %v3596_v41, %v1726_v22  ;;  %v1738_v47 = vadd.f32 %v3596_v41, %v1719_v5  ;;  %v3704_v54 = vsel %vm1529_vm3, %v1526_v0, %v1481_v35  ;;  %v924_v14 = vadd.f32 %v2837_v42, %v3573_v12 }
 0x192   : > { %v1722_v28 = vadd.f32 %v1706_v16, %v3591_v38  ;;  %v1721_v34 = vadd.f32 %v1705_v25, %v3577_v24  ;;  %v1712_v23 = vmul.f32 %v3704_v54, %v3579_v26  ;;  %v1527_v38 = vsel %vm1512_vm2, %v3517_v39, %v1363_v33  ;;  %v1495_v33 = vpop.permute.xlu2 %1494 }
 0x193   : > { %v1761_v30 = vmax.f32 %v1745_v45, 0.0  ;;  %v1754_v8 = vmax.f32 %v1738_v47, 0.0 }
 0x194   : > { %v1741_v57 = vadd.f32 %v3596_v41, %v1722_v28  ;;  %v1740_v35 = vadd.f32 %v3596_v41, %v1721_v34 }
 0x195   : > { %v1771_v19 = vpack.c.bf16 %v1761_v30, %v1760_v63 }
 0x196   : > { %v1671_v60 = vpop.f32.mrf.mxu2  ;;  %v1689_v49 = vpop.f32.mrf.mxu3  ;;  %v1756_v45 = vmax.f32 %v1740_v35, 0.0 }
 0x197   : > { %v1720_v18 = vadd.f32 %v1704_v3, %v1671_v60  ;;  %v1474_v48 = vpop.permute.xlu0 %1473  ;;  %1858 = vmatmul.bf16.gmra.mxu1 %v1771_v19  ;;  %v1757_v3 = vmax.f32 %v1741_v57, 0.0 }
 0x198   : > { %v3681_v17 = vsel %vm1529_vm3, %v1525_v37, %v1474_v48 }
 0x199   : > { %v1739_v59 = vadd.f32 %v3596_v41, %v1720_v18  ;;  %v1711_v21 = vmul.f32 %v3681_v17, %v3579_v26  ;;  %v1511_v18 = vsel %vm932_vm1, %v3437_v40, %v3524_v44  ;;  %v1769_v39 = vpack.c.bf16 %v1757_v3, %v1756_v45 }
 0x19b   : > { %v1755_v20 = vmax.f32 %v1739_v59, 0.0  ;;  %v1727_v62 = vadd.f32 %v1711_v21, %v1689_v49  ;;  %v3740_v49 = vld [vmem:[%s4120_s18] ss:$0 sm:$0xff]  ;;  %v3744_v21 = vmax.f32 %v924_v14, 0.0  ;;  %s4007_s18 = scalar_lea.vmem [#allocation3], %s2560_s24  ;;  %s2863_s24 = scalar_lea.hbm %s4125_s22, 64 }
 0x19d   : > { %v1768_v10 = vpack.c.bf16 %v1755_v20, %v1754_v8  ;;  %v1746_v5 = vadd.f32 %v3596_v41, %v1727_v62 }
 0x19e   : > { %v1691_v50 = vpop.f32.mrf.mxu3 }
 0x19f   : > { %1843 = vmatmul.bf16.gmra.mxu0 %v1768_v10  ;;  %v1370_v55 = vpop.permute.xlu0 %1369  ;;  %v1728_v46 = vadd.f32 %v1712_v23, %v1691_v50  ;;  %v1762_v24 = vmax.f32 %v1746_v5, 0.0 }
 0x1a0   : > { %v1528_v37 = vsel %vm1512_vm2, %v1511_v18, %v1370_v55 }
 0x1a1   : > { %v1747_v58 = vadd.f32 %v3596_v41, %v1728_v46  ;;  %v3728_v30 = vsel %vm1529_vm3, %v1528_v37, %v1495_v33 }
 0x1a2   : > { %v1714_v63 = vmul.f32 %v3728_v30, %v3579_v26 }
 0x1a3   : > { %v1763_v43 = vmax.f32 %v1747_v58, 0.0 }
 0x1a5   : > { %v1772_v47 = vpack.c.bf16 %v1763_v43, %v1762_v24 }
 0x1a6   : > { %v1694_v48 = vpop.f32.mrf.mxu3 }
 0x1a7   : > { %v1488_v22 = vpop.permute.xlu0 %1487  ;;  %1863 = vmatmul.bf16.gmra.mxu1 %v1772_v47 }
 0x1a8   : > { %v3719_v60 = vsel %vm1529_vm3, %v1527_v38, %v1488_v22 }
 0x1a9   : > { %v1713_v51 = vmul.f32 %v3719_v60, %v3579_v26 }
 0x1ab   : > { %v1729_v59 = vadd.f32 %v1713_v51, %v1694_v48 }
 0x1ad   : > { %v1748_v40 = vadd.f32 %v3596_v41, %v1729_v59 }
 0x1ae   : > { %v1696_v6 = vpop.f32.mrf.mxu3 }
 0x1af   : > { %1848 = vmatmul.bf16.gmra.mxu0 %v1769_v39  ;;  %v1730_v29 = vadd.f32 %v1714_v63, %v1696_v6  ;;  %v1764_v20 = vmax.f32 %v1748_v40, 0.0 }
 0x1b1   : > { %v1749_v44 = vadd.f32 %v3596_v41, %v1730_v29 }
 0x1b3   : > { %v1765_v8 = vmax.f32 %v1749_v44, 0.0 }
 0x1b5   : > { %v1773_v19 = vpack.c.bf16 %v1765_v8, %v1764_v20 }
 0x1b7   : > { %1868 = vmatmul.bf16.gmra.mxu1 %v1773_v19 }
 0x1fc   : > { %v1834_v26 = vpop.f32.mrf.mxu0 }
 0x1fd   : > { %v1835_v0 = vadd.f32 %v3740_v49, %v1834_v26 }
 0x1ff   : > { %v1874_v41 = vmax.f32 %v1835_v0, 0.0 }
 0x201   : > { %v1922_v10 = vmul.f32 %v1874_v41, %v3582_v27 }
 0x203   : > { %v1938_v16 = vmul.f32 %v1922_v10, %v3744_v21 }
 0x204   : > { %v1836_v55 = vpop.f32.mrf.mxu0  ;;  %v1854_v27 = vpop.f32.mrf.mxu1 }
 0x205   : > { %v1954_v25 = vrot.slane %v1938_v16, 4  ;;  %v1837_v28 = vadd.f32 %v3740_v49, %v1836_v55  ;;  %v1855_v46 = vadd.f32 %v3740_v49, %v1854_v27 }
 0x207   : > { %v1955_v62 = vadd.f32 %v1954_v25, %v1938_v16  ;;  %v1875_v34 = vmax.f32 %v1837_v28, 0.0  ;;  %v1882_v58 = vmax.f32 %v1855_v46, 0.0 }
 0x209   : > { %v1956_v12 = vrot.slane %v1955_v62, 2  ;;  %v2698_v23 = vpack.c.bf16 %v1875_v34, %v1874_v41  ;;  %v1923_v50 = vmul.f32 %v1875_v34, %v3589_v36  ;;  %v1930_v3 = vmul.f32 %v1882_v58, %v3605_v56 }
 0x20b   : > { %v1957_v57 = vadd.f32 %v1956_v12, %v1955_v62  ;;  %2699 = vst [vmem:[%s3754_s26] sm:$0xff] %v2698_v23   ;;  %v1939_v5 = vmul.f32 %v1923_v50, %v3744_v21  ;;  %v1946_v45 = vmul.f32 %v1930_v3, %v3744_v21 }
 0x20c   : > { %v1839_v35 = vpop.f32.mrf.mxu0  ;;  %v1856_v36 = vpop.f32.mrf.mxu1 }
 0x20d   : > { %v1960_v22 = vrot.slane %v1939_v5, 4  ;;  %v1958_v38 = vrot.slane %v1957_v57, 1  ;;  %v2002_v56 = vrot.slane %v1946_v45, 4  ;;  %v1857_v48 = vadd.f32 %v3740_v49, %v1856_v36 }
 0x20e   : > { %v1840_v37 = vadd.f32 %v3740_v49, %v1839_v35 }
 0x20f   : > { %v1961_v43 = vadd.f32 %v1960_v22, %v1939_v5  ;;  %v3761_v24 = vadd.f32 %v1958_v38, %v1957_v57  ;;  %v2003_v39 = vadd.f32 %v2002_v56, %v1946_v45  ;;  %v1883_v33 = vmax.f32 %v1857_v48, 0.0 }
 0x210   : > { %v1876_v44 = vmax.f32 %v1840_v37, 0.0 }
 0x211   : > { %v1962_v47 = vrot.slane %v1961_v43, 2  ;;  %2194 = vrot.lane.b32.xlu1 %v3761_v24, %s2939_s19  ;;  %2130 = vrot.lane.b32.xlu0 %v3761_v24, %s2940_s2  ;;  %v2004_v6 = vrot.slane %v2003_v39, 2  ;;  %v2718_v29 = vpack.c.bf16 %v1883_v33, %v1882_v58  ;;  %v1931_v40 = vmul.f32 %v1883_v33, %v3622_v53 }
 0x212   : > { %2066 = vrot.lane.b32.xlu2 %v3761_v24, %s2941_s25  ;;  %v1924_v50 = vmul.f32 %v1876_v44, %v3616_v4 }
 0x213   : > { %v1963_v18 = vadd.f32 %v1962_v47, %v1961_v43  ;;  %v2005_v19 = vadd.f32 %v2004_v6, %v2003_v39  ;;  %2738 = vst [vmem:[%s3754_s26 + $0x20] sm:$0xff] %v2718_v29   ;;  %v1947_v42 = vmul.f32 %v1931_v40, %v3744_v21 }
 0x214   : > { %v1841_v51 = vpop.f32.mrf.mxu0  ;;  %v1859_v26 = vpop.f32.mrf.mxu1  ;;  %v1940_v3 = vmul.f32 %v1924_v50, %v3744_v21 }
 0x215   : > { %v1842_v59 = vadd.f32 %v3740_v49, %v1841_v51  ;;  %v1964_v63 = vrot.slane %v1963_v18, 1  ;;  %v2008_v0 = vrot.slane %v1947_v42, 4  ;;  %v1860_v41 = vadd.f32 %v3740_v49, %v1859_v26 }
 0x216   : > { %v2006_v10 = vrot.slane %v2005_v19, 1  ;;  %v1966_v37 = vrot.slane %v1940_v3, 4 }
 0x217   : > { %v1877_v8 = vmax.f32 %v1842_v59, 0.0  ;;  %v3774_v20 = vadd.f32 %v1964_v63, %v1963_v18  ;;  %v2009_v53 = vadd.f32 %v2008_v0, %v1947_v42  ;;  %v1884_v55 = vmax.f32 %v1860_v41, 0.0 }
 0x218   : > { %v3782_v25 = vadd.f32 %v2006_v10, %v2005_v19 }
 0x219   : > { %v2703_v14 = vpack.c.bf16 %v1877_v8, %v1876_v44  ;;  %2132 = vrot.lane.b32.xlu1 %v3774_v20, %s2940_s2  ;;  %v2010_v28 = vrot.slane %v2009_v53, 2  ;;  %v1932_v62 = vmul.f32 %v1884_v55, %v3642_v2  ;;  %v1925_v47 = vmul.f32 %v1877_v8, %v3627_v32 }
 0x21a   : > { %2210 = vrot.lane.b32.xlu0 %v3782_v25, %s2939_s19  ;;  %2082 = vrot.lane.b32.xlu2 %v3782_v25, %s2941_s25  ;;  %v1967_v8 = vadd.f32 %v1966_v37, %v1940_v3 }
 0x21b   : > { %2735 = vst [vmem:[%s3754_s26 + $0x8] sm:$0xff] %v2703_v14   ;;  %v2011_v12 = vadd.f32 %v2010_v28, %v2009_v53  ;;  %v1948_v23 = vmul.f32 %v1932_v62, %v3744_v21  ;;  %v1941_v39 = vmul.f32 %v1925_v47, %v3744_v21 }
 0x21c   : > { %v1844_v16 = vpop.f32.mrf.mxu0  ;;  %v1861_v27 = vpop.f32.mrf.mxu1  ;;  %v1968_v10 = vrot.slane %v1967_v8, 2 }
 0x21d   : > { %v1845_v34 = vadd.f32 %v3740_v49, %v1844_v16  ;;  %v2014_v57 = vrot.slane %v1948_v23, 4  ;;  %v1862_v46 = vadd.f32 %v3740_v49, %v1861_v27  ;;  %v2012_v5 = vrot.slane %v2011_v12, 1 }
 0x21e   : > { %v1972_v19 = vrot.slane %v1941_v39, 4 }
 0x21f   : > { %v1878_v35 = vmax.f32 %v1845_v34, 0.0  ;;  %v2015_v58 = vadd.f32 %v2014_v57, %v1948_v23  ;;  %v1885_v22 = vmax.f32 %v1862_v46, 0.0  ;;  %v3793_v38 = vadd.f32 %v2012_v5, %v2011_v12 }
 0x220   : > { %v1973_v53 = vadd.f32 %v1972_v19, %v1941_v39  ;;  %v1969_v57 = vadd.f32 %v1968_v10, %v1967_v8 }
 0x221   : > { %v2016_v45 = vrot.slane %v2015_v58, 2  ;;  %v2723_v4 = vpack.c.bf16 %v1885_v22, %v1884_v55  ;;  %v1933_v36 = vmul.f32 %v1885_v22, %v3660_v7  ;;  %2212 = vrot.lane.b32.xlu1 %v3793_v38, %s2939_s19  ;;  %v1926_v56 = vmul.f32 %v1878_v35, %v3657_v13 }
 0x222   : > { %2196 = vrot.lane.b32.xlu0 %v3774_v20, %s2939_s19  ;;  %2146 = vrot.lane.b32.xlu2 %v3782_v25, %s2940_s2  ;;  %v1974_v46 = vrot.slane %v1973_v53, 2 }
 0x223   : > { %v2017_v48 = vadd.f32 %v2016_v45, %v2015_v58  ;;  %2739 = vst [vmem:[%s3754_s26 + $0x28] sm:$0xff] %v2723_v4   ;;  %v1949_v32 = vmul.f32 %v1933_v36, %v3744_v21  ;;  %v1942_v6 = vmul.f32 %v1926_v56, %v3744_v21  ;;  %v1970_v4 = vrot.slane %v1969_v57, 1 }
 0x224   : > { %v1846_v2 = vpop.f32.mrf.mxu0  ;;  %v1864_v51 = vpop.f32.mrf.mxu1  ;;  %v1975_v36 = vadd.f32 %v1974_v46, %v1973_v53 }
 0x225   : > { %v1847_v43 = vadd.f32 %v3740_v49, %v1846_v2  ;;  %v2020_v33 = vrot.slane %v1949_v32, 4  ;;  %v1865_v59 = vadd.f32 %v3740_v49, %v1864_v51  ;;  %v2018_v63 = vrot.slane %v2017_v48, 1 }
 0x226   : > { %v1978_v26 = vrot.slane %v1942_v6, 4  ;;  %v3842_v37 = vadd.f32 %v1970_v4, %v1969_v57  ;;  %v1976_v39 = vrot.slane %v1975_v36, 1 }
 0x227   : > { %v1879_v18 = vmax.f32 %v1847_v43, 0.0  ;;  %v2021_v29 = vadd.f32 %v2020_v33, %v1949_v32  ;;  %v1886_v40 = vmax.f32 %v1865_v59, 0.0  ;;  %v3812_v44 = vadd.f32 %v2018_v63, %v2017_v48 }
 0x228   : > { %v1979_v62 = vadd.f32 %v1978_v26, %v1942_v6  ;;  %v3856_v19 = vadd.f32 %v1976_v39, %v1975_v36 }
 0x229   : > { %v2708_v7 = vpack.c.bf16 %v1879_v18, %v1878_v35  ;;  %v2022_v42 = vrot.slane %v2021_v29, 2  ;;  %2150 = vrot.lane.b32.xlu1 %v3812_v44, %s2940_s2  ;;  %v1927_v14 = vmul.f32 %v1879_v18, %v3667_v52  ;;  %v1934_v41 = vmul.f32 %v1886_v40, %v3681_v17 }
 0x22a   : > { %2148 = vrot.lane.b32.xlu0 %v3793_v38, %s2940_s2  ;;  %2068 = vrot.lane.b32.xlu2 %v3774_v20, %s2941_s25  ;;  %v1980_v35 = vrot.slane %v1979_v62, 2 }
 0x22b   : > { %2736 = vst [vmem:[%s3754_s26 + $0x10] sm:$0xff] %v2708_v7   ;;  %v2023_v0 = vadd.f32 %v2022_v42, %v2021_v29  ;;  %v1943_v34 = vmul.f32 %v1927_v14, %v3744_v21  ;;  %v1950_v52 = vmul.f32 %v1934_v41, %v3744_v21 }
 0x22c   : > { %v1849_v13 = vpop.f32.mrf.mxu0  ;;  %v1866_v16 = vpop.f32.mrf.mxu1  ;;  %v1981_v56 = vadd.f32 %v1980_v35, %v1979_v62 }
 0x22d   : > { %v1867_v55 = vadd.f32 %v3740_v49, %v1866_v16  ;;  %v2024_v28 = vrot.slane %v2023_v0, 1  ;;  %v1850_v12 = vadd.f32 %v3740_v49, %v1849_v13  ;;  %v1984_v2 = vrot.slane %v1943_v34, 4 }
 0x22e   : > { %v2026_v3 = vrot.slane %v1950_v52, 4  ;;  %v1982_v7 = vrot.slane %v1981_v56, 1 }
 0x22f   : > { %v1887_v50 = vmax.f32 %v1867_v55, 0.0  ;;  %v3826_v27 = vadd.f32 %v2024_v28, %v2023_v0  ;;  %v1880_v58 = vmax.f32 %v1850_v12, 0.0  ;;  %v1985_v18 = vadd.f32 %v1984_v2, %v1943_v34 }
 0x230   : > { %v2027_v48 = vadd.f32 %v2026_v3, %v1950_v52  ;;  %v3854_v8 = vadd.f32 %v1982_v7, %v1981_v56 }
 0x231   : > { %v2728_v5 = vpack.c.bf16 %v1887_v50, %v1886_v40  ;;  %2088 = vrot.lane.b32.xlu1 %v3826_v27, %s2941_s25  ;;  %v1935_v43 = vmul.f32 %v1887_v50, %v3704_v54  ;;  %v1986_v51 = vrot.slane %v1985_v18, 2  ;;  %v1928_v54 = vmul.f32 %v1880_v58, %v3699_v31 }
 0x232   : > { %2086 = vrot.lane.b32.xlu0 %v3812_v44, %s2941_s25  ;;  %2084 = vrot.lane.b32.xlu2 %v3793_v38, %s2941_s25  ;;  %v2028_v33 = vrot.slane %v2027_v48, 2 }
 0x233   : > { %2740 = vst [vmem:[%s3754_s26 + $0x30] sm:$0xff] %v2728_v5   ;;  %v1951_v32 = vmul.f32 %v1935_v43, %v3744_v21  ;;  %v1987_v29 = vadd.f32 %v1986_v51, %v1985_v18  ;;  %v1944_v40 = vmul.f32 %v1928_v54, %v3744_v21 }
 0x234   : > { %v1851_v23 = vpop.f32.mrf.mxu0  ;;  %v1869_v45 = vpop.f32.mrf.mxu1  ;;  %v2029_v31 = vadd.f32 %v2028_v33, %v2027_v48 }
 0x235   : > { %v3829_v17 = vadd.f32 %v3740_v49, %v1851_v23  ;;  %v2032_v59 = vrot.slane %v1951_v32, 4  ;;  %v1870_v63 = vadd.f32 %v3740_v49, %v1869_v45  ;;  %v1988_v16 = vrot.slane %v1987_v29, 1 }
 0x236   : > { %v2030_v53 = vrot.slane %v2029_v31, 1 }
 0x237   : > { %v1881_v22 = vmax.f32 %v3829_v17, 0.0  ;;  %v2033_v42 = vadd.f32 %v2032_v59, %v1951_v32  ;;  %v1888_v26 = vmax.f32 %v1870_v63, 0.0  ;;  %v3867_v34 = vadd.f32 %v1988_v16, %v1987_v29  ;;  %v3921_v59 = vpop.xlane.xlu1 %1377  ;;  %v3923_v63 = vpop.xlane.xlu0 %1380 }
 0x238   : > { %v3869_v12 = vadd.f32 %v2030_v53, %v2029_v31 }
 0x239   : > { %v2713_v47 = vpack.c.bf16 %v1881_v22, %v1880_v58  ;;  %2216 = vrot.lane.b32.xlu1 %v3826_v27, %s2939_s19  ;;  %v2034_v41 = vrot.slane %v2033_v42, 2  ;;  %v1936_v10 = vmul.f32 %v1888_v26, %v3719_v60  ;;  %v1929_v52 = vmul.f32 %v1881_v22, %v3690_v61 }
 0x23a   : > { %2214 = vrot.lane.b32.xlu0 %v3812_v44, %s2939_s19  ;;  %2070 = vrot.lane.b32.xlu2 %v3842_v37, %s2941_s25 }
 0x23b   : > { %2737 = vst [vmem:[%s3754_s26 + $0x18] sm:$0xff] %v2713_v47   ;;  %v2035_v28 = vadd.f32 %v2034_v41, %v2033_v42  ;;  %v1952_v62 = vmul.f32 %v1936_v10, %v3744_v21  ;;  %v1945_v46 = vmul.f32 %v1929_v52, %v3744_v21 }
 0x23c   : > { %v1871_v6 = vpop.f32.mrf.mxu1 }
 0x23d   : > { %v1872_v13 = vadd.f32 %v3740_v49, %v1871_v6  ;;  %v1990_v49 = vrot.slane %v1944_v40, 4  ;;  %v2038_v23 = vrot.slane %v1952_v62, 4  ;;  %v2036_v50 = vrot.slane %v2035_v28, 1 }
 0x23e   : > { %v1996_v2 = vrot.slane %v1945_v46, 4 }
 0x23f   : > { %v1889_v14 = vmax.f32 %v1872_v13, 0.0  ;;  %v1991_v55 = vadd.f32 %v1990_v49, %v1944_v40  ;;  %v2039_v17 = vadd.f32 %v2038_v23, %v1952_v62  ;;  %v3879_v5 = vadd.f32 %v2036_v50, %v2035_v28 }
 0x240   : > { %v1997_v3 = vadd.f32 %v1996_v2, %v1945_v46 }
 0x241   : > { %v2733_v0 = vpack.c.bf16 %v1889_v14, %v1888_v26  ;;  %2138 = vrot.lane.b32.xlu1 %v3854_v8, %s2940_s2  ;;  %v1992_v60 = vrot.slane %v1991_v55, 2  ;;  %v2040_v35 = vrot.slane %v2039_v17, 2  ;;  %v1937_v61 = vmul.f32 %v1889_v14, %v3728_v30 }
 0x242   : > { %2136 = vrot.lane.b32.xlu0 %v3856_v19, %s2940_s2  ;;  %2134 = vrot.lane.b32.xlu2 %v3842_v37, %s2940_s2  ;;  %v1998_v47 = vrot.slane %v1997_v3, 2 }
 0x243   : > { %2741 = vst [vmem:[%s3754_s26 + $0x38] sm:$0xff] %v2733_v0   ;;  %v1993_v57 = vadd.f32 %v1992_v60, %v1991_v55  ;;  %v2041_v22 = vadd.f32 %v2040_v35, %v2039_v17  ;;  %v1953_v43 = vmul.f32 %v1937_v61, %v3744_v21  ;;  %s2379_s26 = sshll.u32 %s2376_s23, 4  ;;  %s2380_s26 = int_to_ptr.hbm [resolvable:$true] %s2379_s26 }
 0x244   : > { %v1999_v30 = vadd.f32 %v1998_v47, %v1997_v3  ;;  %s2857_s13 = sshra.s32 %s2380_s26, 4  ;;  %s2858_s13 = int_to_ptr.hbm [resolvable:$true] %s2857_s13 }
 0x245   : > { %v1994_v58 = vrot.slane %v1993_v57, 1  ;;  %v2044_v4 = vrot.slane %v1953_v43, 4  ;;  %v2042_v36 = vrot.slane %v2041_v22, 1  ;;  %s2859_s30 = scalar_lea.hbm %s2858_s13, 16  ;;  %p2864_p7 = scmp.lt.s32.totalorder %s2858_s13, %s4125_s22 }
 0x246   : > { %v2000_v48 = vrot.slane %v1999_v30, 1  ;;  %p2860_p4 = scmp.ne.s32.totalorder %s2858_s13, %s2859_s30  ;;  %p2865_p10 = scmp.lt.s32.totalorder %s2863_s24, %s2859_s30 }
 0x247   : > { %v3889_v45 = vadd.f32 %v1994_v58, %v1993_v57  ;;  %v2045_v56 = vadd.f32 %v2044_v4, %v1953_v43  ;;  %v3897_v18 = vadd.f32 %v2042_v36, %v2041_v22 }
 0x248   : > { %v3905_v51 = vadd.f32 %v2000_v48, %v1999_v30  ;;  %p2861_p5 = pnand %p2860_p4, %p3099_p8  ;;  %p2866_p11 = por %p2865_p10, %p2864_p7 }
 0x249   : > { %2076 = vrot.lane.b32.xlu1 %v3867_v34, %s2941_s25  ;;  %v2046_v21 = vrot.slane %v2045_v56, 2 }
 0x24a   : > { %2154 = vrot.lane.b32.xlu0 %v3869_v12, %s2940_s2  ;;  %2198 = vrot.lane.b32.xlu2 %v3842_v37, %s2939_s19  ;;  %p2862_p6 = pneg %p2861_p5 }
 0x24b   : > { %v2047_v32 = vadd.f32 %v2046_v21, %v2045_v56 }
 0x24c   : > { %p2867_p12 = pnand %p2866_p11, %p2862_p6 }
 0x24d   : > { %v2048_v7 = vrot.slane %v2047_v32, 1 }
 0x24f   : > { %v3913_v39 = vadd.f32 %v2048_v7, %v2047_v32 }
 0x251   : > { %2156 = vrot.lane.b32.xlu1 %v3879_v5, %s2940_s2 }
 0x252   : > { %2218 = vrot.lane.b32.xlu0 %v3869_v12, %s2939_s19  ;;  %2072 = vrot.lane.b32.xlu2 %v3856_v19, %s2941_s25 }
 0x259   : > { %2206 = vrot.lane.b32.xlu1 %v3889_v45, %s2939_s19 }
 0x25a   : > { %2092 = vrot.lane.b32.xlu0 %v3879_v5, %s2941_s25  ;;  %2200 = vrot.lane.b32.xlu2 %v3856_v19, %s2939_s19 }
 0x261   : > { %2094 = vrot.lane.b32.xlu1 %v3897_v18, %s2941_s25 }
 0x262   : > { %2220 = vrot.lane.b32.xlu0 %v3879_v5, %s2939_s19  ;;  %2152 = vrot.lane.b32.xlu2 %v3826_v27, %s2940_s2 }
 0x269   : > { %2144 = vrot.lane.b32.xlu1 %v3905_v51, %s2940_s2 }
 0x26a   : > { %2078 = vrot.lane.b32.xlu0 %v3889_v45, %s2941_s25  ;;  %2074 = vrot.lane.b32.xlu2 %v3854_v8, %s2941_s25 }
 0x26c   : > { %v2067_v54 = vpop.permute.xlu2 %2066 }
 0x26d   : > { %v2114_v13 = vadd.f32 %v2067_v54, %v3761_v24 }
 0x271   : > { %2160 = vrot.lane.b32.xlu1 %v3913_v39, %s2940_s2 }
 0x272   : > { %2142 = vrot.lane.b32.xlu0 %v3889_v45, %s2940_s2  ;;  %2202 = vrot.lane.b32.xlu2 %v3854_v8, %s2939_s19 }
 0x274   : > { %v2083_v33 = vpop.permute.xlu2 %2082 }
 0x275   : > { %v2122_v6 = vadd.f32 %v2083_v33, %v3782_v25 }
 0x279   : > { %2224 = vrot.lane.b32.xlu1 %v3913_v39, %s2939_s19 }
 0x27a   : > { %2208 = vrot.lane.b32.xlu0 %v3905_v51, %s2939_s19  ;;  %2090 = vrot.lane.b32.xlu2 %v3869_v12, %s2941_s25 }
 0x27c   : > { %v2147_v29 = vpop.permute.xlu2 %2146 }
 0x27d   : > { %v2186_v40 = vadd.f32 %v2147_v29, %v2122_v6 }
 0x282   : > { %2140 = vrot.lane.b32.xlu2 %v3867_v34, %s2940_s2 }
 0x283   : > { %v2195_v31 = vpop.permute.xlu1 %2194  ;;  %v2131_v42 = vpop.permute.xlu0 %2130 }
 0x284   : > { %v2178_v26 = vadd.f32 %v2131_v42, %v2114_v13  ;;  %v2069_v0 = vpop.permute.xlu2 %2068 }
 0x285   : > { %v2115_v49 = vadd.f32 %v2069_v0, %v3774_v20 }
 0x286   : > { %v2242_v14 = vadd.f32 %v2195_v31, %v2178_v26 }
 0x28a   : > { %2204 = vrot.lane.b32.xlu2 %v3867_v34, %s2939_s19 }
 0x28b   : > { %v2133_v41 = vpop.permute.xlu1 %2132 }
 0x28c   : > { %v2179_v10 = vadd.f32 %v2133_v41, %v2115_v49  ;;  %v2211_v25 = vpop.permute.xlu0 %2210  ;;  %v2085_v16 = vpop.permute.xlu2 %2084 }
 0x28d   : > { %v2250_v24 = vadd.f32 %v2211_v25, %v2186_v40  ;;  %v2123_v20 = vadd.f32 %v2085_v16, %v3793_v38 }
 0x292   : > { %2158 = vrot.lane.b32.xlu2 %v3897_v18, %s2940_s2  ;;  %s2377_s2 = sshll.u32 %s4007_s18, 4  ;;  %s2378_s2 = int_to_ptr.vmem [resolvable:$true] %s2377_s2 }
 0x293   : > { %v2213_v62 = vpop.permute.xlu1 %2212 }
 0x294   : > { %v2197_v53 = vpop.permute.xlu0 %2196  ;;  %v2071_v55 = vpop.permute.xlu2 %2070 }
 0x295   : > { %v2243_v28 = vadd.f32 %v2197_v53, %v2179_v10  ;;  %v2116_v52 = vadd.f32 %v2071_v55, %v3842_v37 }
 0x297   : > { %v2306_v60 = vrot.slane %v2243_v28, 7 }
 0x299   : > { %v2308_v23 = vsel %vm2307_vm4, %v2306_v60, %v2242_v14 }
 0x29a   : > { %2080 = vrot.lane.b32.xlu2 %v3905_v51, %s2941_s25 }
 0x29b   : > { %v2151_v2 = vpop.permute.xlu1 %2150 }
 0x29c   : > { %v2149_v50 = vpop.permute.xlu0 %2148  ;;  %v2135_v57 = vpop.permute.xlu2 %2134 }
 0x29d   : > { %v2187_v17 = vadd.f32 %v2149_v50, %v2123_v20  ;;  %v2180_v46 = vadd.f32 %v2135_v57, %v2116_v52 }
 0x29f   : > { %v2251_v35 = vadd.f32 %v2213_v62, %v2187_v17  ;;  %v1383_v17 = vadd.f32 %v3923_v63, %v3412_v15 }
 0x2a1   : > { %v2327_v61 = vrot.slane %v2251_v35, 7 }
 0x2a2   : > { %2096 = vrot.lane.b32.xlu2 %v3913_v39, %s2941_s25  ;;  %s2359_s25 = scalar_lea.sflag [#allocation4], %s3134_s21 }
 0x2a3   : > { %v2328_v58 = vsel %vm2307_vm4, %v2327_v61, %v2250_v24  ;;  %v2089_v36 = vpop.permute.xlu1 %2088 }
 0x2a4   : > { %v2087_v22 = vpop.permute.xlu0 %2086  ;;  %v2199_v3 = vpop.permute.xlu2 %2198  ;;  %v2125_v31 = vadd.f32 %v2089_v36, %v3826_v27  ;;  %v1382_v27 = vadd.f32 %v3921_v59, %v3408_v9 }
 0x2a5   : > { %v2124_v38 = vadd.f32 %v2087_v22, %v3812_v44  ;;  %v2244_v43 = vadd.f32 %v2199_v3, %v2180_v46 }
 0x2a6   : > { %v2258_v20 = vmax.f32 %v1382_v27, 1e-12 }
 0x2a7   : > { %v2188_v47 = vadd.f32 %v2151_v2, %v2124_v38  ;;  %v2309_v4 = vrot.slane %v2244_v43, 6  ;;  %v3967_v2 = vmax.f32 %v1383_v17, 1e-12 }
 0x2a8   : > { %2839 = vrcp.f32 %v2258_v20  ;;  %vm2265_vm9 = vweird.f32 %v2258_v20 }
 0x2a9   : > { %v2311_v37 = vsel %vm2310_vm5, %v2309_v4, %v2308_v23  ;;  %2841 = vrcp.f32 %v3967_v2  ;;  %vm2280_vm0 = vweird.f32 %v3967_v2 }
 0x2aa   : > { %2222 = vrot.lane.b32.xlu2 %v3897_v18, %s2939_s19 }
 0x2ab   : > { %v2217_v7 = vpop.permute.xlu1 %2216 }
 0x2ac   : > { %v2215_v30 = vpop.permute.xlu0 %2214  ;;  %v2073_v56 = vpop.permute.xlu2 %2072 }
 0x2ad   : > { %v2252_v21 = vadd.f32 %v2215_v30, %v2188_v47  ;;  %v2117_v54 = vadd.f32 %v2073_v56, %v3856_v19 }
 0x2ae   : > { %v2840_v46 = vpop.eup %2839 }
 0x2af   : > { %v2329_v48 = vrot.slane %v2252_v21, 6  ;;  %v2261_v35 = vmul.f32 %v2840_v46, %v2258_v20  ;;  %v3975_v36 = vpop.eup %2841  ;;  %vm2266_vm8 = vweird.f32 %v2840_v46 }
 0x2b0   : > { %vm3985_vm11 = vmor %vm2265_vm9, %vm2266_vm8  ;;  %vm2281_vm15 = vweird.f32 %v3975_v36 }
 0x2b1   : > { %v2330_v32 = vsel %vm2310_vm5, %v2329_v48, %v2328_v58  ;;  %v2262_v22 = vsub.f32 1.0, %v2261_v35  ;;  %vm2282_vm2 = vmor %vm2280_vm0, %vm2281_vm15 }
 0x2b3   : > { %v2139_v14 = vpop.permute.xlu1 %2138 }
 0x2b4   : > { %v2137_v33 = vpop.permute.xlu0 %2136  ;;  %v2201_v6 = vpop.permute.xlu2 %2200 }
 0x2b5   : > { %v2181_v44 = vadd.f32 %v2137_v33, %v2117_v54  ;;  %v2271_v54 = vand.u32 2147483648, %v2258_v20 }
 0x2b7   : > { %v2245_v13 = vadd.f32 %v2201_v6, %v2181_v44  ;;  %v2269_v6 = vand.u32 2147483647, %v2258_v20 }
 0x2b9   : > { %v2312_v29 = vrot.slane %v2245_v13, 5  ;;  %vm2270_vm14 = vcmp.eq.f32.partialorder %v2269_v6, 8.507059e+37 }
 0x2bb   : > { %v2314_v40 = vsel %vm2313_vm6, %v2312_v29, %v2311_v37  ;;  %v2077_v16 = vpop.permute.xlu1 %2076  ;;  %v2263_v37 = vmul.f32 %v2840_v46, %v2262_v22 }
 0x2bc   : > { %v2155_v42 = vpop.permute.xlu0 %2154  ;;  %v2153_v26 = vpop.permute.xlu2 %2152  ;;  %v2119_v59 = vadd.f32 %v2077_v16, %v3867_v34 }
 0x2bd   : > { %v2189_v0 = vadd.f32 %v2153_v26, %v2125_v31 }
 0x2bf   : > { %v2253_v49 = vadd.f32 %v2217_v7, %v2189_v0  ;;  %v2276_v7 = vmul.f32 %v3975_v36, %v3967_v2 }
 0x2c1   : > { %v2331_v41 = vrot.slane %v2253_v49, 5  ;;  %v2272_v49 = vor.u32 1.1754944e-38, %v2271_v54 }
 0x2c3   : > { %v3951_v10 = vsel %vm2313_vm6, %v2331_v41, %v2330_v32  ;;  %v3957_v55 = vpop.permute.xlu1 %2156  ;;  %v2264_v32 = vadd.f32 %v2840_v46, %v2263_v37  ;;  %v2277_v41 = vsub.f32 1.0, %v2276_v7 }
 0x2c4   : > { %v2075_v25 = vpop.permute.xlu2 %2074  ;;  %v3953_v19 = vpop.permute.xlu0 %2218 }
 0x2c5   : > { %v2118_v61 = vadd.f32 %v2075_v25, %v3854_v8 }
 0x2c7   : > { %v2182_v3 = vadd.f32 %v2139_v14, %v2118_v61 }
 0x2cb   : > { %v2207_v60 = vpop.permute.xlu1 %2206 }
 0x2cc   : > { %v2203_v24 = vpop.permute.xlu2 %2202  ;;  %v3955_v53 = vpop.permute.xlu0 %2092 }
 0x2cd   : > { %v2246_v15 = vadd.f32 %v2203_v24, %v2182_v3 }
 0x2cf   : > { %v2315_v8 = vrot.slane %v2246_v15, 4 }
 0x2d1   : > { %v2317_v44 = vsel %vm2316_vm7, %v2315_v8, %v2314_v40  ;;  %v2268_v40 = vsel %vm3985_vm11, %v2840_v46, %v2264_v32 }
 0x2d3   : > { %v3963_v57 = vpop.permute.xlu1 %2094 }
 0x2d4   : > { %v2091_v28 = vpop.permute.xlu2 %2090  ;;  %v3961_v62 = vpop.permute.xlu0 %2220  ;;  %v2128_v46 = vadd.f32 %v3963_v57, %v3897_v18  ;;  %v2284_v57 = vand.u32 2147483647, %v3967_v2 }
 0x2d5   : > { %v2126_v34 = vadd.f32 %v2091_v28, %v3869_v12 }
 0x2d6   : > { %vm2285_vm3 = vcmp.eq.f32.partialorder %v2284_v57, 8.507059e+37 }
 0x2d7   : > { %v2190_v29 = vadd.f32 %v2155_v42, %v2126_v34  ;;  %v2127_v42 = vadd.f32 %v3955_v53, %v3879_v5 }
 0x2d9   : > { %v2254_v28 = vadd.f32 %v3953_v19, %v2190_v29 }
 0x2db   : > { %v2145_v47 = vpop.permute.xlu1 %2144  ;;  %v2333_v17 = vrot.slane %v2254_v28, 4 }
 0x2dc   : > { %v2141_v23 = vpop.permute.xlu2 %2140  ;;  %v2079_v52 = vpop.permute.xlu0 %2078 }
 0x2dd   : > { %v2120_v38 = vadd.f32 %v2079_v52, %v3889_v45  ;;  %v2183_v43 = vadd.f32 %v2141_v23, %v2119_v59  ;;  %v2835_v45 = vld [vmem:[%s4122_s1] ss:$0 sm:$0xff]  ;;  %v2278_v52 = vmul.f32 %v3975_v36, %v2277_v41  ;;  %v2334_v18 = vsel %vm2316_vm7, %v2333_v17, %v3951_v10 }
 0x2de   : > { %v991_v0 = vadd.f32 %v2835_v45, %v3560_v1  ;;  %v2273_v1 = vsel %vm2270_vm14, %v2272_v49, %v2268_v40  ;;  %v994_v22 = vadd.f32 %v2835_v45, %v3571_v11 }
 0x2df   : > { %v2279_v61 = vadd.f32 %v3975_v36, %v2278_v52 }
 0x2e0   : > { %v996_v23 = vmax.f32 %v991_v0, 0.0  ;;  %v997_v11 = vmax.f32 %v994_v22, 0.0 }
 0x2e1   : > { %v2283_v3 = vsel %vm2282_vm2, %v3975_v36, %v2279_v61 }
 0x2e3   : > { %v2161_v26 = vpop.permute.xlu1 %2160 }
 0x2e4   : > { %v2205_v50 = vpop.permute.xlu2 %2204  ;;  %v2143_v58 = vpop.permute.xlu0 %2142 }
 0x2e5   : > { %v2184_v63 = vadd.f32 %v2143_v58, %v2120_v38  ;;  %v2247_v4 = vadd.f32 %v2205_v50, %v2183_v43  ;;  %v2191_v50 = vadd.f32 %v3957_v55, %v2127_v42  ;;  %v2286_v55 = vand.u32 2147483648, %v3967_v2 }
 0x2e7   : > { %v2248_v30 = vadd.f32 %v2207_v60, %v2184_v63  ;;  %v2318_v21 = vrot.slane %v2247_v4, 3  ;;  %v2255_v19 = vadd.f32 %v3961_v62, %v2191_v50  ;;  %v2287_v43 = vor.u32 1.1754944e-38, %v2286_v55 }
 0x2e9   : > { %v2321_v12 = vrot.slane %v2248_v30, 2  ;;  %v2320_v31 = vsel %vm2319_vm10, %v2318_v21, %v2317_v44  ;;  %v2288_v2 = vsel %vm2285_vm3, %v2287_v43, %v2283_v3 }
 0x2eb   : > { %v2323_v16 = vsel %vm2322_vm12, %v2321_v12, %v2320_v31  ;;  %v2225_v35 = vpop.permute.xlu1 %2224 }
 0x2ec   : > { %v3970_v9 = vpop.permute.xlu2 %2158  ;;  %v2209_v13 = vpop.permute.xlu0 %2208 }
 0x2f4   : > { %v2081_v56 = vpop.permute.xlu2 %2080 }
 0x2f5   : > { %v2121_v48 = vadd.f32 %v2081_v56, %v3905_v51 }
 0x2f7   : > { %v2185_v33 = vadd.f32 %v2145_v47, %v2121_v48 }
 0x2f9   : > { %v2249_v14 = vadd.f32 %v2209_v13, %v2185_v33 }
 0x2fb   : > { %v2324_v25 = vrot.slane %v2249_v14, 1 }
 0x2fc   : > { %v2097_v24 = vpop.permute.xlu2 %2096 }
 0x2fd   : > { %v2326_v27 = vsel %vm2325_vm13, %v2324_v25, %v2323_v16  ;;  %v2129_v60 = vadd.f32 %v2097_v24, %v3913_v39  ;;  %v2192_v39 = vadd.f32 %v3970_v9, %v2128_v46  ;;  %v2335_v9 = vrot.slane %v2255_v19, 3 }
 0x2fe   : > { %v2343_v20 = vmul.f32 %v2326_v27, %v2273_v1 }
 0x2ff   : > { %v2193_v53 = vadd.f32 %v2161_v26, %v2129_v60  ;;  %v2336_v47 = vsel %vm2319_vm10, %v2335_v9, %v2334_v18 }
 0x300   : > { %v2345_v5 = vadd.f32 %v2343_v20, %v996_v23 }
 0x301   : > { %v2257_v59 = vadd.f32 %v2225_v35, %v2193_v53 }
 0x302   : > { %2347 = vst.msk [vmem:[%s4007_s18] sm:$0xff] %vm932_vm1, %v2345_v5 }
 0x303   : > { %v2339_v15 = vrot.slane %v2257_v59, 1 }
 0x304   : > { %v2223_v58 = vpop.permute.xlu2 %2222 }
 0x305   : > { %v2256_v62 = vadd.f32 %v2223_v58, %v2192_v39 }
 0x307   : > { %v2337_v38 = vrot.slane %v2256_v62, 2 }
 0x309   : > { %v2338_v10 = vsel %vm2322_vm12, %v2337_v38, %v2336_v47 }
 0x30a   : > { %v2340_v63 = vsel %vm2325_vm13, %v2339_v15, %v2338_v10 }
 0x30b   : > { %v2344_v4 = vmul.f32 %v2340_v63, %v2288_v2 }
 0x30d   : > { %v2346_v37 = vadd.f32 %v2344_v4, %v997_v11 }
 0x30f   : > { %2348 = vst.msk [vmem:[%s4007_s18 + $0x8] sm:$0xff] %vm932_vm1, %v2346_v37 }
 0x310   : > { %2870 = shalt.err (!%p2867_p12)
}
 0x311   : > { %s2942_s21 = smov 128   ;;  %s2943_s18 = smov 8  }
 0x312   : > { %2754 = dma.vmem_to_hbm [thread:$0]  (%p3099_p8), %s2378_s2, 256, %s2380_s26, %s2359_s25, %s2942_s21, %s2942_s21, %s2943_s18  }
 0x313 PF: > { %s4127_s17 = sld [smem:[#allocation6_spill]]  ;;  %p2760_p13 = scmp.ge.s32.totalorder %s2937_s20, 2 }
 0x315   : > { %p2757_p0 = pnand %p2760_p13, %p3103_p9 }
 0x317   : > { %p2758_p1 = pneg %p2757_p0 }
 0x319   : > { %s2406_s23 = sand.u32 1, %s4127_s17  }
 0x31a   : > { %s2407_s1 = scalar_lea.sflag [#allocation4], %s2406_s23 }
 0x31b   : > { %2904 = dma.done.wait (%p2758_p1), %s2407_s1, 256  }
 0x31c   : > { %2906 = vsyncadd (%p2758_p1), %s2407_s1, 4294967040  ;;  %s32_s20 = sadd.s32 1, %s2937_s20   ;;  %s4129_s13 = sld [smem:[#allocation13_spill]] }
 0x31d   : > { %p29_p2 = scmp.ge.s32.totalorder %s32_s20, 6   ;;  %s4130_s30 = sld [smem:[#allocation7_spill]] }
 0x31e   : > { %s4131_s0 = sld [smem:[#allocation8_spill]]  ;;  %s4134_s27 = smov %s2913_s28 }
 0x31f   : > { %s4132_s19 = sld [smem:[#allocation9_spill]]  ;;  %s4135_s28 = smov %s2917_s29 }
 0x320   : > { %s4133_s1 = sld [smem:[#allocation10_spill]]  ;;  %31 = sbr.rel (!%p29_p2) target bundleno = 14 (0xe), region = 190 }
 0x322   : > { %s4136_s29 = smov %s4129_s13 }
 0x325   :  { %2413 = vsyncpa [#allocation4], 1 }
 0x326   :  { %2415 = vsyncpa [#allocation4 + $0x1], 1 }

</bundles_post_ra>
